<compile_context>
chip_gen: v7x
topology: tpu7x:2x2x1
jax: 0.10.0
libtpu: 0.0.40
codegen_flags: <defaults>
</compile_context>

<pallas_src>
import functools

import jax
import jax.numpy as jnp
import numpy as np
from jax.experimental import pallas as pl
from jax.experimental.pallas import tpu as pltpu

# ----------------------------- configuration -------------------------------
NUM_SEMANTICS = 8
NUM_THINGS = 3
OUT_SEMANTICS = NUM_SEMANTICS            # things_stuff = False
INS_CHANNELS = 3 + 1 + NUM_THINGS        # center_offset(3) + edge(1) + density
RAW_CHANNELS = OUT_SEMANTICS + INS_CHANNELS   # Mask output channels (15)
HIDDEN = NUM_SEMANTICS + INS_CHANNELS         # conv1 input channels (15)
JOINT_MUL = 2                            # joint_type == 'affine'
EPS = 1e-6
LRELU_SLOPE = 0.2
PAD_LEFT = 128                           # 128-aligned lane offset for seg in the
                                         # conv scratch -> unmasked full-tile store


def _recip(d):
    """EUP approximate reciprocal + one Newton step (f32-accurate, no divide)."""
    r = pl.reciprocal(d, approx=True)
    return r * (2.0 - d * r)


# ------------------------- fused forward kernel -----------------------------
def fused_block_kernel(x_ref, wmT_ref, bm_ref, sc_ref, ic_ref, w1_ref, b1_ref,
                       xout_ref, seg_ref, msk_ref, rawsem_ref,
                       pad_ref, *, H, W, cin):
    """Mask(1x1) + AssistedActivation + conv1(3x3) + affine fuse, one batch."""
    HW = H * W
    PR = W + 1                                          # right halo width
    OUT1 = JOINT_MUL * cin

    x = x_ref[...]                                      # (Cin, HW)

    # ---- Mask: sem_conv + ins_conv (both 1x1) as one MXU matmul ------------
    raw = jnp.dot(wmT_ref[...], x,
                  preferred_element_type=jnp.float32) + bm_ref[...]   # (15, HW)
    rawsem_ref[...] = raw[:OUT_SEMANTICS, :]

    # ---- one row-wise spatial softmax pass over ALL raw channels -----------
    # Each row's softmax is independent (per-row max / exp / sum over lanes),
    # so the sem softmax (rows 0:8) and the density softmax (rows 12:15) share
    # a single XLU-reduce + EUP-exp pass; rows 8:12 are discarded for free.
    m = jnp.max(raw, axis=1, keepdims=True)             # (15, 1)  lane reduce
    e = jnp.exp(raw - m)
    sm = e * _recip(jnp.sum(e, axis=1, keepdims=True))  # (15, HW)

    # ---- cond_sem_activation (sem_assisted, not weakly) --------------------
    sem_mask = sm[:OUT_SEMANTICS, :] * sc_ref[...] * float(HW)   # sc: (8,1)
    msk_ref[...] = sem_mask
    smp = sem_mask + EPS
    sem_seg = smp * _recip(jnp.sum(smp, axis=0, keepdims=True))  # channel renorm

    # ---- cond_ins_activation ------------------------------------------------
    ins = raw[OUT_SEMANTICS:, :]                        # (7, HW)
    center = jax.nn.sigmoid(ins[0:1, :])
    offset = jnp.tanh(ins[1:3, :])
    edge = jax.nn.sigmoid(ins[3:4, :])
    dens = sm[OUT_SEMANTICS + 4:, :] * ic_ref[...]      # reuse merged softmax

    # ---- seg = torch.cat([...], dim=1): assembled in-register, stored once --
    seg = jnp.concatenate([sem_seg, center, offset, edge, dens], axis=0)  # (15,HW)
    seg_ref[...] = seg

    # ---- conv1: 3x3, SAME padding, computed from VMEM ----------------------
    # seg sits at a 128-aligned lane offset inside a zero-padded scratch; tap
    # (dy,dx) is a shifted slice (shift = dy*W + dx).  The zero halo handles
    # the top/bottom edges; a per-lane column mask kills the wrap across row
    # boundaries for dx=+-1.
    pad_ref[...] = jnp.zeros_like(pad_ref)
    pad_ref[:, PAD_LEFT:PAD_LEFT + HW] = seg            # aligned full-tile store

    lane = jax.lax.broadcasted_iota(jnp.int32, (1, HW), 1)
    if W & (W - 1) == 0:
        col = jax.lax.bitwise_and(lane, W - 1)
    else:
        col = jax.lax.rem(lane, W)
    not_left = col >= 1                                 # valid for dx = -1
    not_right = col <= W - 2                            # valid for dx = +1

    # bias seeds the accumulator -> no separate bias add at the end
    acc = jnp.broadcast_to(b1_ref[...], (OUT1, HW)).astype(jnp.float32)
    t = 0
    for dy in (-1, 0, 1):
        for dx in (-1, 0, 1):
            s = dy * W + dx
            tap = pad_ref[:, PAD_LEFT + s:PAD_LEFT + s + HW]   # (15, HW) shifted
            if dx == -1:
                tap = jnp.where(not_left, tap, 0.0)
            elif dx == 1:
                tap = jnp.where(not_right, tap, 0.0)
            acc = acc + jnp.dot(w1_ref[t], tap,
                                preferred_element_type=jnp.float32)
            t += 1

    # ---- joint_type == 'affine': x = sigmoid(alpha) * x + lrelu(beta) ------
    alpha = acc[:cin, :]
    beta = acc[cin:, :]
    xout_ref[...] = (jax.nn.sigmoid(alpha) * x
                     + jnp.where(beta >= 0.0, beta, LRELU_SLOPE * beta))


# ------------------------------- wrapper ------------------------------------
def assisted_block_forward(x_nchw, sem_cond, ins_cond, params):
    B, Cin, H, W = x_nchw.shape
    HW = H * W
    OUT1 = Cin * JOINT_MUL
    PAD_W = PAD_LEFT + HW + W + 1                        # scratch lane width

    # NCHW -> (B, Cin, HW): pure reshape, no transpose.
    x_flat = x_nchw.reshape(B, Cin, HW)

    wmT = params["w_mask"].T                            # (15, Cin), pre-scaled
    bm = params["b_mask"].reshape(RAW_CHANNELS, 1)
    # stack the 9 transposed taps of the 3x3 kernel: (9, OUT1, HIDDEN)
    w1_taps = jnp.transpose(params["w1_hwio"], (0, 1, 3, 2)).reshape(
        9, OUT1, HIDDEN)
    b1 = params["b1"].reshape(OUT1, 1)

    # filter_sem_cond is per-batch scalar work -> fold into the wrapper.
    # NOTE: like the PyTorch module, an all-below-threshold sem_cond gives NaN.
    sc = jnp.where(sem_cond < 1.0 / HW, 0.0, sem_cond)
    sc = sc / jnp.sum(sc, axis=1, keepdims=True)
    sc = sc.reshape(B, OUT_SEMANTICS, 1)
    ic = ins_cond.reshape(B, NUM_THINGS, 1)

    per_b = lambda c: pl.BlockSpec((None, c, HW), lambda b: (b, 0, 0))

    def full(*shape):
        nd = len(shape)
        return pl.BlockSpec(shape, lambda b: (0,) * nd)

    kernel = functools.partial(fused_block_kernel, H=H, W=W, cin=Cin)

    x_out, seg_all, sem_mask, raw_sem = pl.pallas_call(
        kernel,
        out_shape=(
            jax.ShapeDtypeStruct((B, Cin, HW), jnp.float32),            # x
            jax.ShapeDtypeStruct((B, HIDDEN, HW), jnp.float32),         # seg
            jax.ShapeDtypeStruct((B, OUT_SEMANTICS, HW), jnp.float32),  # sem_mask
            jax.ShapeDtypeStruct((B, NUM_SEMANTICS, HW), jnp.float32),  # raw_sem
        ),
        grid=(B,),
        in_specs=[
            per_b(Cin),                                  # x
            full(RAW_CHANNELS, Cin),                     # w_mask^T
            full(RAW_CHANNELS, 1),                       # b_mask
            pl.BlockSpec((None, OUT_SEMANTICS, 1), lambda b: (b, 0, 0)),  # sem_cond
            pl.BlockSpec((None, NUM_THINGS, 1), lambda b: (b, 0, 0)),     # ins_cond
            full(9, OUT1, HIDDEN),                       # conv1 taps
            full(OUT1, 1),                               # conv1 bias
        ],
        out_specs=(per_b(Cin), per_b(HIDDEN), per_b(OUT_SEMANTICS),
                   per_b(NUM_SEMANTICS)),
        scratch_shapes=[pltpu.VMEM((HIDDEN, PAD_W), jnp.float32)],
        compiler_params=pltpu.CompilerParams(
            dimension_semantics=("parallel",)),
    )(x_flat, wmT, bm, sc, ic, w1_taps, b1)

    seg_img = seg_all.reshape(B, HIDDEN, H, W)
    i0 = OUT_SEMANTICS
    output_dict = {
        "sem_seg": seg_img[:, :i0],
        "ins_center": seg_img[:, i0:i0 + 1],
        "ins_offset": seg_img[:, i0 + 1:i0 + 3],
        "ins_edge": seg_img[:, i0 + 3:i0 + 4],
        "ins_density": seg_img[:, i0 + 4:],
        "sem_mask": sem_mask.reshape(B, OUT_SEMANTICS, H, W),
        "raw_sem_seg": raw_sem.reshape(B, NUM_SEMANTICS, H, W),
    }
    return x_out.reshape(B, Cin, H, W), output_dict


# ----------------------- plain-JAX reference (for checking) -----------------
def reference_forward(x_nchw, sem_cond, ins_cond, params):
    x = jnp.transpose(x_nchw, (0, 2, 3, 1)).astype(jnp.float32)     # NHWC
    B, H, W, Cin = x.shape
    raw = jnp.einsum("bhwc,cd->bhwd", x, params["w_mask"]) + params["b_mask"]
    raw_sem = raw[..., :OUT_SEMANTICS]
    sc = jnp.where(sem_cond < 1.0 / (H * W), 0.0, sem_cond)
    sc = sc / jnp.sum(sc, axis=1, keepdims=True)
    sem_sm = jax.nn.softmax(raw_sem.reshape(B, H * W, OUT_SEMANTICS), axis=1
                            ).reshape(B, H, W, OUT_SEMANTICS)
    sem_mask = sem_sm * sc[:, None, None, :] * (H * W)
    sem_seg = (sem_mask + EPS) / jnp.sum(sem_mask + EPS, axis=3, keepdims=True)
    ins = raw[..., OUT_SEMANTICS:]
    center = jax.nn.sigmoid(ins[..., 0:1])
    offset = jnp.tanh(ins[..., 1:3])
    edge = jax.nn.sigmoid(ins[..., 3:4])
    dens = jax.nn.softmax(ins[..., 4:].reshape(B, H * W, NUM_THINGS), axis=1
                          ).reshape(B, H, W, NUM_THINGS)
    dens = dens * ins_cond[:, None, None, :]
    seg = jnp.concatenate([sem_seg, center, offset, edge, dens], axis=-1)
    y = jax.lax.conv_general_dilated(
        seg, params["w1_hwio"], (1, 1), "SAME",
        dimension_numbers=("NHWC", "HWIO", "NHWC")) + params["b1"]
    alpha, beta = y[..., :Cin], y[..., Cin:]
    out = jax.nn.sigmoid(alpha) * x + jnp.where(beta >= 0, beta, LRELU_SLOPE * beta)
    return jnp.transpose(out, (0, 3, 1, 2)), jnp.transpose(seg, (0, 3, 1, 2))


# --------------------------------- main --------------------------------------
if __name__ == "__main__":
    B, Cin, H, W = 2, 32, 16, 16
    OUT1 = Cin * JOINT_MUL

    key = jax.random.PRNGKey(0)
    kx, kw0, kw1, kb0, kb1, ksc, kic = jax.random.split(key, 7)

    # EqualizedConv2d (gain=1): weight ~ N(0,1) scaled at runtime by 1/sqrt(fan_in).
    # sem_conv and ins_conv are both 1x1 convs on the same input -> fused into
    # one (Cin, RAW_CHANNELS) weight (first 8 cols = sem_conv, last 7 = ins_conv).
    w_mask = jax.random.normal(kw0, (Cin, RAW_CHANNELS), jnp.float32) / np.sqrt(Cin)
    b_mask = 0.1 * jax.random.normal(kb0, (RAW_CHANNELS,), jnp.float32)
    w1_hwio = jax.random.normal(kw1, (3, 3, HIDDEN, OUT1), jnp.float32) / np.sqrt(HIDDEN * 9)
    b1 = 0.1 * jax.random.normal(kb1, (OUT1,), jnp.float32)
    params = {"w_mask": w_mask, "b_mask": b_mask, "w1_hwio": w1_hwio, "b1": b1}

    x = jax.random.normal(kx, (B, Cin, H, W), jnp.float32)
    sem_cond = jax.nn.softmax(jax.random.normal(ksc, (B, OUT_SEMANTICS)), axis=1)
    ins_cond = jax.random.uniform(kic, (B, NUM_THINGS), jnp.float32)
    cond = {"sem_cond": sem_cond, "ins_cond": ins_cond}

    fwd = jax.jit(assisted_block_forward)
    x_out, out_dict = fwd(x, cond["sem_cond"], cond["ins_cond"], params)
    jax.block_until_ready(x_out)

    # correctness check against a plain-JAX reference
    x_ref, seg_ref = reference_forward(x, sem_cond, ins_cond, params)
    seg_kernel = jnp.concatenate(
        [out_dict["sem_seg"], out_dict["ins_center"], out_dict["ins_offset"],
         out_dict["ins_edge"], out_dict["ins_density"]], axis=1)
    np.testing.assert_allclose(np.asarray(seg_kernel), np.asarray(seg_ref),
                               rtol=2e-4, atol=2e-4)
    np.testing.assert_allclose(np.asarray(x_out), np.asarray(x_ref),
                               rtol=2e-4, atol=2e-4)

    print("KERNEL_OK")
</pallas_src>

<mosaic_0001>
module attributes {stable_mosaic.version = 11 : i64} {
  func.func @fused_block_kernel(%arg0: i32, %arg1: memref<1x32x256xf32, #tpu.memory_space<vmem>>, %arg2: memref<15x32xf32, #tpu.memory_space<vmem>>, %arg3: memref<15x1xf32, #tpu.memory_space<vmem>>, %arg4: memref<1x8x1xf32, #tpu.memory_space<vmem>>, %arg5: memref<1x3x1xf32, #tpu.memory_space<vmem>>, %arg6: memref<9x64x15xf32, #tpu.memory_space<vmem>>, %arg7: memref<64x1xf32, #tpu.memory_space<vmem>>, %arg8: memref<1x32x256xf32, #tpu.memory_space<vmem>>, %arg9: memref<1x15x256xf32, #tpu.memory_space<vmem>>, %arg10: memref<1x8x256xf32, #tpu.memory_space<vmem>>, %arg11: memref<1x8x256xf32, #tpu.memory_space<vmem>>, %arg12: memref<15x401xf32, #tpu.memory_space<vmem>>) attributes {dimension_semantics = [#tpu.dimension_semantics<parallel>], iteration_bounds = array<i64: 2>, scalar_prefetch = 0 : i64, scratch_operands = 1 : i64, tpu.core_type = #tpu.core_type<tc>, window_params = [{transform_indices = @transform_0, window_bounds = array<i64: 1, 32, 256>}, {pipeline_mode = #tpu.pipeline_mode<synchronous>, transform_indices = @transform_1, window_bounds = array<i64: 15, 32>}, {pipeline_mode = #tpu.pipeline_mode<synchronous>, transform_indices = @transform_2, window_bounds = array<i64: 15, 1>}, {transform_indices = @transform_3, window_bounds = array<i64: 1, 8, 1>}, {transform_indices = @transform_4, window_bounds = array<i64: 1, 3, 1>}, {pipeline_mode = #tpu.pipeline_mode<synchronous>, transform_indices = @transform_5, window_bounds = array<i64: 9, 64, 15>}, {pipeline_mode = #tpu.pipeline_mode<synchronous>, transform_indices = @transform_6, window_bounds = array<i64: 64, 1>}, {transform_indices = @transform_7, window_bounds = array<i64: 1, 32, 256>}, {transform_indices = @transform_8, window_bounds = array<i64: 1, 15, 256>}, {transform_indices = @transform_9, window_bounds = array<i64: 1, 8, 256>}, {transform_indices = @transform_10, window_bounds = array<i64: 1, 8, 256>}]} {
    %c0 = arith.constant 0 : index
    %c0_0 = arith.constant 0 : index
    %c0_1 = arith.constant 0 : index
    %0 = vector.load %arg1[%c0, %c0_0, %c0_1] : memref<1x32x256xf32, #tpu.memory_space<vmem>>, vector<1x32x256xf32>
    %1 = vector.shape_cast %0 : vector<1x32x256xf32> to vector<32x256xf32>
    %c0_2 = arith.constant 0 : index
    %c0_3 = arith.constant 0 : index
    %2 = vector.load %arg2[%c0_2, %c0_3] : memref<15x32xf32, #tpu.memory_space<vmem>>, vector<15x32xf32>
    %cst = arith.constant dense<0.000000e+00> : vector<15x256xf32>
    %3 = tpu.matmul %2, %1, %cst {dimension_numbers = #tpu.dot_dimension_numbers<[1], [0], [0], [1], [0, 0, 1, 1], [], []>} : vector<15x32xf32>, vector<32x256xf32>, vector<15x256xf32> -> vector<15x256xf32>
    %c0_4 = arith.constant 0 : index
    %c0_5 = arith.constant 0 : index
    %4 = vector.load %arg3[%c0_4, %c0_5] : memref<15x1xf32, #tpu.memory_space<vmem>>, vector<15x1xf32>
    %5 = vector.broadcast %4 : vector<15x1xf32> to vector<15x256xf32>
    %6 = arith.addf %3, %5 : vector<15x256xf32>
    %7 = vector.extract_strided_slice %6 {offsets = [0, 0], sizes = [8, 256], strides = [1, 1]} : vector<15x256xf32> to vector<8x256xf32>
    %c0_6 = arith.constant 0 : index
    %c0_7 = arith.constant 0 : index
    %c0_8 = arith.constant 0 : index
    %8 = vector.load %arg11[%c0_6, %c0_7, %c0_8] : memref<1x8x256xf32, #tpu.memory_space<vmem>>, vector<1x8x256xf32>
    %9 = vector.shape_cast %8 : vector<1x8x256xf32> to vector<8x256xf32>
    %10 = vector.shape_cast %7 : vector<8x256xf32> to vector<1x8x256xf32>
    tpu.vector_store %arg11[%c0_6, %c0_7, %c0_8], %10 {strides = array<i32>} : memref<1x8x256xf32, #tpu.memory_space<vmem>>, vector<1x8x256xf32>,
    %cst_9 = arith.constant dense<0xFF800000> : vector<15xf32>
    %11 = vector.multi_reduction <maximumf>, %6, %cst_9 [1] : vector<15x256xf32> to vector<15xf32>
    %12 = vector.shape_cast %11 : vector<15xf32> to vector<15x1xf32>
    %13 = vector.broadcast %12 : vector<15x1xf32> to vector<15x256xf32>
    %14 = arith.subf %6, %13 : vector<15x256xf32>
    %15 = math.exp %14 : vector<15x256xf32>
    %cst_10 = arith.constant dense<0.000000e+00> : vector<15xf32>
    %16 = vector.multi_reduction <add>, %15, %cst_10 [1] : vector<15x256xf32> to vector<15xf32>
    %17 = vector.shape_cast %16 : vector<15xf32> to vector<15x1xf32>
    %18 = tpu.reciprocal %17 {approx = true} : vector<15x1xf32> -> vector<15x1xf32>
    %19 = arith.mulf %17, %18 : vector<15x1xf32>
    %cst_11 = arith.constant 2.000000e+00 : f32
    %20 = vector.broadcast %cst_11 : f32 to vector<15x1xf32>
    %21 = arith.subf %20, %19 : vector<15x1xf32>
    %22 = arith.mulf %18, %21 : vector<15x1xf32>
    %23 = vector.broadcast %22 : vector<15x1xf32> to vector<15x256xf32>
    %24 = arith.mulf %15, %23 : vector<15x256xf32>
    %25 = vector.extract_strided_slice %24 {offsets = [0, 0], sizes = [8, 256], strides = [1, 1]} : vector<15x256xf32> to vector<8x256xf32>
    %c0_12 = arith.constant 0 : index
    %c0_13 = arith.constant 0 : index
    %c0_14 = arith.constant 0 : index
    %26 = vector.load %arg4[%c0_12, %c0_13, %c0_14] : memref<1x8x1xf32, #tpu.memory_space<vmem>>, vector<1x8x1xf32>
    %27 = vector.shape_cast %26 : vector<1x8x1xf32> to vector<8x1xf32>
    %28 = vector.broadcast %27 : vector<8x1xf32> to vector<8x256xf32>
    %29 = arith.mulf %25, %28 : vector<8x256xf32>
    %cst_15 = arith.constant 2.560000e+02 : f32
    %30 = vector.broadcast %cst_15 : f32 to vector<8x256xf32>
    %31 = arith.mulf %29, %30 : vector<8x256xf32>
    %c0_16 = arith.constant 0 : index
    %c0_17 = arith.constant 0 : index
    %c0_18 = arith.constant 0 : index
    %32 = vector.load %arg10[%c0_16, %c0_17, %c0_18] : memref<1x8x256xf32, #tpu.memory_space<vmem>>, vector<1x8x256xf32>
    %33 = vector.shape_cast %32 : vector<1x8x256xf32> to vector<8x256xf32>
    %34 = vector.shape_cast %31 : vector<8x256xf32> to vector<1x8x256xf32>
    tpu.vector_store %arg10[%c0_16, %c0_17, %c0_18], %34 {strides = array<i32>} : memref<1x8x256xf32, #tpu.memory_space<vmem>>, vector<1x8x256xf32>,
    %cst_19 = arith.constant 9.99999997E-7 : f32
    %35 = vector.broadcast %cst_19 : f32 to vector<8x256xf32>
    %36 = arith.addf %31, %35 : vector<8x256xf32>
    %cst_20 = arith.constant dense<0.000000e+00> : vector<256xf32>
    %37 = vector.multi_reduction <add>, %36, %cst_20 [0] : vector<8x256xf32> to vector<256xf32>
    %38 = vector.shape_cast %37 : vector<256xf32> to vector<1x256xf32>
    %39 = tpu.reciprocal %38 {approx = true} : vector<1x256xf32> -> vector<1x256xf32>
    %40 = arith.mulf %38, %39 : vector<1x256xf32>
    %cst_21 = arith.constant 2.000000e+00 : f32
    %41 = vector.broadcast %cst_21 : f32 to vector<1x256xf32>
    %42 = arith.subf %41, %40 : vector<1x256xf32>
    %43 = arith.mulf %39, %42 : vector<1x256xf32>
    %44 = vector.broadcast %43 : vector<1x256xf32> to vector<8x256xf32>
    %45 = arith.mulf %36, %44 : vector<8x256xf32>
    %46 = vector.extract_strided_slice %6 {offsets = [8, 0], sizes = [7, 256], strides = [1, 1]} : vector<15x256xf32> to vector<7x256xf32>
    %47 = vector.extract_strided_slice %46 {offsets = [0, 0], sizes = [1, 256], strides = [1, 1]} : vector<7x256xf32> to vector<1x256xf32>
    %48 = arith.negf %47 : vector<1x256xf32>
    %49 = math.exp %48 : vector<1x256xf32>
    %cst_22 = arith.constant 1.000000e+00 : f32
    %50 = vector.broadcast %cst_22 : f32 to vector<1x256xf32>
    %51 = arith.addf %50, %49 : vector<1x256xf32>
    %52 = arith.divf %50, %51 : vector<1x256xf32>
    %53 = vector.extract_strided_slice %46 {offsets = [1, 0], sizes = [2, 256], strides = [1, 1]} : vector<7x256xf32> to vector<2x256xf32>
    %54 = math.tanh %53 : vector<2x256xf32>
    %55 = vector.extract_strided_slice %46 {offsets = [3, 0], sizes = [1, 256], strides = [1, 1]} : vector<7x256xf32> to vector<1x256xf32>
    %56 = arith.negf %55 : vector<1x256xf32>
    %57 = math.exp %56 : vector<1x256xf32>
    %cst_23 = arith.constant 1.000000e+00 : f32
    %58 = vector.broadcast %cst_23 : f32 to vector<1x256xf32>
    %59 = arith.addf %58, %57 : vector<1x256xf32>
    %60 = arith.divf %58, %59 : vector<1x256xf32>
    %61 = vector.extract_strided_slice %24 {offsets = [12, 0], sizes = [3, 256], strides = [1, 1]} : vector<15x256xf32> to vector<3x256xf32>
    %c0_24 = arith.constant 0 : index
    %c0_25 = arith.constant 0 : index
    %c0_26 = arith.constant 0 : index
    %62 = vector.load %arg5[%c0_24, %c0_25, %c0_26] : memref<1x3x1xf32, #tpu.memory_space<vmem>>, vector<1x3x1xf32>
    %63 = vector.shape_cast %62 : vector<1x3x1xf32> to vector<3x1xf32>
    %64 = vector.broadcast %63 : vector<3x1xf32> to vector<3x256xf32>
    %65 = arith.mulf %61, %64 : vector<3x256xf32>
    %66 = tpu.concatenate %45, %52, %54, %60, %65 in 0 : vector<8x256xf32>, vector<1x256xf32>, vector<2x256xf32>, vector<1x256xf32>, vector<3x256xf32> -> vector<15x256xf32>
    %c0_27 = arith.constant 0 : index
    %c0_28 = arith.constant 0 : index
    %c0_29 = arith.constant 0 : index
    %67 = vector.load %arg9[%c0_27, %c0_28, %c0_29] : memref<1x15x256xf32, #tpu.memory_space<vmem>>, vector<1x15x256xf32>
    %68 = vector.shape_cast %67 : vector<1x15x256xf32> to vector<15x256xf32>
    %69 = vector.shape_cast %66 : vector<15x256xf32> to vector<1x15x256xf32>
    tpu.vector_store %arg9[%c0_27, %c0_28, %c0_29], %69 {strides = array<i32>} : memref<1x15x256xf32, #tpu.memory_space<vmem>>, vector<1x15x256xf32>,
    %cst_30 = arith.constant 0.000000e+00 : f32
    %70 = vector.broadcast %cst_30 : f32 to vector<15x401xf32>
    %c0_31 = arith.constant 0 : index
    %c0_32 = arith.constant 0 : index
    %71 = vector.load %arg12[%c0_31, %c0_32] : memref<15x401xf32, #tpu.memory_space<vmem>>, vector<15x401xf32>
    tpu.vector_store %arg12[%c0_31, %c0_32], %70 {strides = array<i32>} : memref<15x401xf32, #tpu.memory_space<vmem>>, vector<15x401xf32>,
    %c0_33 = arith.constant 0 : index
    %c128 = arith.constant 128 : index
    %72 = vector.load %arg12[%c0_33, %c128] : memref<15x401xf32, #tpu.memory_space<vmem>>, vector<15x256xf32>
    tpu.vector_store %arg12[%c0_33, %c128], %66 {strides = array<i32>} : memref<15x401xf32, #tpu.memory_space<vmem>>, vector<15x256xf32>,
    %73 = tpu.iota {dimensions = array<i32: 1>} : vector<1x256xi32>
    %c15_i32 = arith.constant 15 : i32
    %74 = vector.broadcast %c15_i32 : i32 to vector<1x256xi32>
    %75 = arith.andi %73, %74 : vector<1x256xi32>
    %c1_i32 = arith.constant 1 : i32
    %76 = vector.broadcast %c1_i32 : i32 to vector<1x256xi32>
    %77 = arith.cmpi sge, %75, %76 : vector<1x256xi32>
    %c14_i32 = arith.constant 14 : i32
    %78 = vector.broadcast %c14_i32 : i32 to vector<1x256xi32>
    %79 = arith.cmpi sle, %75, %78 : vector<1x256xi32>
    %c0_34 = arith.constant 0 : index
    %c0_35 = arith.constant 0 : index
    %80 = vector.load %arg7[%c0_34, %c0_35] : memref<64x1xf32, #tpu.memory_space<vmem>>, vector<64x1xf32>
    %81 = vector.shape_cast %80 : vector<64x1xf32> to vector<64x1xf32>
    %82 = vector.broadcast %81 : vector<64x1xf32> to vector<64x256xf32>
    %c0_36 = arith.constant 0 : index
    %c111 = arith.constant 111 : index
    %83 = vector.load %arg12[%c0_36, %c111] : memref<15x401xf32, #tpu.memory_space<vmem>>, vector<15x256xf32>
    %cst_37 = arith.constant 0.000000e+00 : f32
    %84 = vector.shape_cast %77 : vector<1x256xi1> to vector<1x256xi1>
    %85 = vector.broadcast %84 : vector<1x256xi1> to vector<15x256xi1>
    %86 = vector.broadcast %cst_37 : f32 to vector<15x256xf32>
    %87 = arith.select %85, %83, %86 : vector<15x256xi1>, vector<15x256xf32>
    %c0_38 = arith.constant 0 : index
    %c0_39 = arith.constant 0 : index
    %c0_40 = arith.constant 0 : index
    %88 = vector.load %arg6[%c0_38, %c0_39, %c0_40] : memref<9x64x15xf32, #tpu.memory_space<vmem>>, vector<1x64x15xf32>
    %89 = vector.shape_cast %88 : vector<1x64x15xf32> to vector<64x15xf32>
    %cst_41 = arith.constant dense<0.000000e+00> : vector<64x256xf32>
    %90 = tpu.matmul %89, %87, %cst_41 {dimension_numbers = #tpu.dot_dimension_numbers<[1], [0], [0], [1], [0, 0, 1, 1], [], []>} : vector<64x15xf32>, vector<15x256xf32>, vector<64x256xf32> -> vector<64x256xf32>
    %91 = arith.addf %82, %90 : vector<64x256xf32>
    %c0_42 = arith.constant 0 : index
    %c112 = arith.constant 112 : index
    %92 = vector.load %arg12[%c0_42, %c112] : memref<15x401xf32, #tpu.memory_space<vmem>>, vector<15x256xf32>
    %c1 = arith.constant 1 : index
    %c0_43 = arith.constant 0 : index
    %c0_44 = arith.constant 0 : index
    %93 = vector.load %arg6[%c1, %c0_43, %c0_44] : memref<9x64x15xf32, #tpu.memory_space<vmem>>, vector<1x64x15xf32>
    %94 = vector.shape_cast %93 : vector<1x64x15xf32> to vector<64x15xf32>
    %cst_45 = arith.constant dense<0.000000e+00> : vector<64x256xf32>
    %95 = tpu.matmul %94, %92, %cst_45 {dimension_numbers = #tpu.dot_dimension_numbers<[1], [0], [0], [1], [0, 0, 1, 1], [], []>} : vector<64x15xf32>, vector<15x256xf32>, vector<64x256xf32> -> vector<64x256xf32>
    %96 = arith.addf %91, %95 : vector<64x256xf32>
    %c0_46 = arith.constant 0 : index
    %c113 = arith.constant 113 : index
    %97 = vector.load %arg12[%c0_46, %c113] : memref<15x401xf32, #tpu.memory_space<vmem>>, vector<15x256xf32>
    %cst_47 = arith.constant 0.000000e+00 : f32
    %98 = vector.shape_cast %79 : vector<1x256xi1> to vector<1x256xi1>
    %99 = vector.broadcast %98 : vector<1x256xi1> to vector<15x256xi1>
    %100 = vector.broadcast %cst_47 : f32 to vector<15x256xf32>
    %101 = arith.select %99, %97, %100 : vector<15x256xi1>, vector<15x256xf32>
    %c2 = arith.constant 2 : index
    %c0_48 = arith.constant 0 : index
    %c0_49 = arith.constant 0 : index
    %102 = vector.load %arg6[%c2, %c0_48, %c0_49] : memref<9x64x15xf32, #tpu.memory_space<vmem>>, vector<1x64x15xf32>
    %103 = vector.shape_cast %102 : vector<1x64x15xf32> to vector<64x15xf32>
    %cst_50 = arith.constant dense<0.000000e+00> : vector<64x256xf32>
    %104 = tpu.matmul %103, %101, %cst_50 {dimension_numbers = #tpu.dot_dimension_numbers<[1], [0], [0], [1], [0, 0, 1, 1], [], []>} : vector<64x15xf32>, vector<15x256xf32>, vector<64x256xf32> -> vector<64x256xf32>
    %105 = arith.addf %96, %104 : vector<64x256xf32>
    %c0_51 = arith.constant 0 : index
    %c127 = arith.constant 127 : index
    %106 = vector.load %arg12[%c0_51, %c127] : memref<15x401xf32, #tpu.memory_space<vmem>>, vector<15x256xf32>
    %cst_52 = arith.constant 0.000000e+00 : f32
    %107 = vector.shape_cast %77 : vector<1x256xi1> to vector<1x256xi1>
    %108 = vector.broadcast %107 : vector<1x256xi1> to vector<15x256xi1>
    %109 = vector.broadcast %cst_52 : f32 to vector<15x256xf32>
    %110 = arith.select %108, %106, %109 : vector<15x256xi1>, vector<15x256xf32>
    %c3 = arith.constant 3 : index
    %c0_53 = arith.constant 0 : index
    %c0_54 = arith.constant 0 : index
    %111 = vector.load %arg6[%c3, %c0_53, %c0_54] : memref<9x64x15xf32, #tpu.memory_space<vmem>>, vector<1x64x15xf32>
    %112 = vector.shape_cast %111 : vector<1x64x15xf32> to vector<64x15xf32>
    %cst_55 = arith.constant dense<0.000000e+00> : vector<64x256xf32>
    %113 = tpu.matmul %112, %110, %cst_55 {dimension_numbers = #tpu.dot_dimension_numbers<[1], [0], [0], [1], [0, 0, 1, 1], [], []>} : vector<64x15xf32>, vector<15x256xf32>, vector<64x256xf32> -> vector<64x256xf32>
    %114 = arith.addf %105, %113 : vector<64x256xf32>
    %c0_56 = arith.constant 0 : index
    %c128_57 = arith.constant 128 : index
    %115 = vector.load %arg12[%c0_56, %c128_57] : memref<15x401xf32, #tpu.memory_space<vmem>>, vector<15x256xf32>
    %c4 = arith.constant 4 : index
    %c0_58 = arith.constant 0 : index
    %c0_59 = arith.constant 0 : index
    %116 = vector.load %arg6[%c4, %c0_58, %c0_59] : memref<9x64x15xf32, #tpu.memory_space<vmem>>, vector<1x64x15xf32>
    %117 = vector.shape_cast %116 : vector<1x64x15xf32> to vector<64x15xf32>
    %cst_60 = arith.constant dense<0.000000e+00> : vector<64x256xf32>
    %118 = tpu.matmul %117, %115, %cst_60 {dimension_numbers = #tpu.dot_dimension_numbers<[1], [0], [0], [1], [0, 0, 1, 1], [], []>} : vector<64x15xf32>, vector<15x256xf32>, vector<64x256xf32> -> vector<64x256xf32>
    %119 = arith.addf %114, %118 : vector<64x256xf32>
    %c0_61 = arith.constant 0 : index
    %c129 = arith.constant 129 : index
    %120 = vector.load %arg12[%c0_61, %c129] : memref<15x401xf32, #tpu.memory_space<vmem>>, vector<15x256xf32>
    %cst_62 = arith.constant 0.000000e+00 : f32
    %121 = vector.shape_cast %79 : vector<1x256xi1> to vector<1x256xi1>
    %122 = vector.broadcast %121 : vector<1x256xi1> to vector<15x256xi1>
    %123 = vector.broadcast %cst_62 : f32 to vector<15x256xf32>
    %124 = arith.select %122, %120, %123 : vector<15x256xi1>, vector<15x256xf32>
    %c5 = arith.constant 5 : index
    %c0_63 = arith.constant 0 : index
    %c0_64 = arith.constant 0 : index
    %125 = vector.load %arg6[%c5, %c0_63, %c0_64] : memref<9x64x15xf32, #tpu.memory_space<vmem>>, vector<1x64x15xf32>
    %126 = vector.shape_cast %125 : vector<1x64x15xf32> to vector<64x15xf32>
    %cst_65 = arith.constant dense<0.000000e+00> : vector<64x256xf32>
    %127 = tpu.matmul %126, %124, %cst_65 {dimension_numbers = #tpu.dot_dimension_numbers<[1], [0], [0], [1], [0, 0, 1, 1], [], []>} : vector<64x15xf32>, vector<15x256xf32>, vector<64x256xf32> -> vector<64x256xf32>
    %128 = arith.addf %119, %127 : vector<64x256xf32>
    %c0_66 = arith.constant 0 : index
    %c143 = arith.constant 143 : index
    %129 = vector.load %arg12[%c0_66, %c143] : memref<15x401xf32, #tpu.memory_space<vmem>>, vector<15x256xf32>
    %cst_67 = arith.constant 0.000000e+00 : f32
    %130 = vector.shape_cast %77 : vector<1x256xi1> to vector<1x256xi1>
    %131 = vector.broadcast %130 : vector<1x256xi1> to vector<15x256xi1>
    %132 = vector.broadcast %cst_67 : f32 to vector<15x256xf32>
    %133 = arith.select %131, %129, %132 : vector<15x256xi1>, vector<15x256xf32>
    %c6 = arith.constant 6 : index
    %c0_68 = arith.constant 0 : index
    %c0_69 = arith.constant 0 : index
    %134 = vector.load %arg6[%c6, %c0_68, %c0_69] : memref<9x64x15xf32, #tpu.memory_space<vmem>>, vector<1x64x15xf32>
    %135 = vector.shape_cast %134 : vector<1x64x15xf32> to vector<64x15xf32>
    %cst_70 = arith.constant dense<0.000000e+00> : vector<64x256xf32>
    %136 = tpu.matmul %135, %133, %cst_70 {dimension_numbers = #tpu.dot_dimension_numbers<[1], [0], [0], [1], [0, 0, 1, 1], [], []>} : vector<64x15xf32>, vector<15x256xf32>, vector<64x256xf32> -> vector<64x256xf32>
    %137 = arith.addf %128, %136 : vector<64x256xf32>
    %c0_71 = arith.constant 0 : index
    %c144 = arith.constant 144 : index
    %138 = vector.load %arg12[%c0_71, %c144] : memref<15x401xf32, #tpu.memory_space<vmem>>, vector<15x256xf32>
    %c7 = arith.constant 7 : index
    %c0_72 = arith.constant 0 : index
    %c0_73 = arith.constant 0 : index
    %139 = vector.load %arg6[%c7, %c0_72, %c0_73] : memref<9x64x15xf32, #tpu.memory_space<vmem>>, vector<1x64x15xf32>
    %140 = vector.shape_cast %139 : vector<1x64x15xf32> to vector<64x15xf32>
    %cst_74 = arith.constant dense<0.000000e+00> : vector<64x256xf32>
    %141 = tpu.matmul %140, %138, %cst_74 {dimension_numbers = #tpu.dot_dimension_numbers<[1], [0], [0], [1], [0, 0, 1, 1], [], []>} : vector<64x15xf32>, vector<15x256xf32>, vector<64x256xf32> -> vector<64x256xf32>
    %142 = arith.addf %137, %141 : vector<64x256xf32>
    %c0_75 = arith.constant 0 : index
    %c145 = arith.constant 145 : index
    %143 = vector.load %arg12[%c0_75, %c145] : memref<15x401xf32, #tpu.memory_space<vmem>>, vector<15x256xf32>
    %cst_76 = arith.constant 0.000000e+00 : f32
    %144 = vector.shape_cast %79 : vector<1x256xi1> to vector<1x256xi1>
    %145 = vector.broadcast %144 : vector<1x256xi1> to vector<15x256xi1>
    %146 = vector.broadcast %cst_76 : f32 to vector<15x256xf32>
    %147 = arith.select %145, %143, %146 : vector<15x256xi1>, vector<15x256xf32>
    %c8 = arith.constant 8 : index
    %c0_77 = arith.constant 0 : index
    %c0_78 = arith.constant 0 : index
    %148 = vector.load %arg6[%c8, %c0_77, %c0_78] : memref<9x64x15xf32, #tpu.memory_space<vmem>>, vector<1x64x15xf32>
    %149 = vector.shape_cast %148 : vector<1x64x15xf32> to vector<64x15xf32>
    %cst_79 = arith.constant dense<0.000000e+00> : vector<64x256xf32>
    %150 = tpu.matmul %149, %147, %cst_79 {dimension_numbers = #tpu.dot_dimension_numbers<[1], [0], [0], [1], [0, 0, 1, 1], [], []>} : vector<64x15xf32>, vector<15x256xf32>, vector<64x256xf32> -> vector<64x256xf32>
    %151 = arith.addf %142, %150 : vector<64x256xf32>
    %152 = vector.extract_strided_slice %151 {offsets = [0, 0], sizes = [32, 256], strides = [1, 1]} : vector<64x256xf32> to vector<32x256xf32>
    %153 = vector.extract_strided_slice %151 {offsets = [32, 0], sizes = [32, 256], strides = [1, 1]} : vector<64x256xf32> to vector<32x256xf32>
    %154 = arith.negf %152 : vector<32x256xf32>
    %155 = math.exp %154 : vector<32x256xf32>
    %cst_80 = arith.constant 1.000000e+00 : f32
    %156 = vector.broadcast %cst_80 : f32 to vector<32x256xf32>
    %157 = arith.addf %156, %155 : vector<32x256xf32>
    %158 = arith.divf %156, %157 : vector<32x256xf32>
    %159 = arith.mulf %158, %1 : vector<32x256xf32>
    %cst_81 = arith.constant 0.000000e+00 : f32
    %160 = vector.broadcast %cst_81 : f32 to vector<32x256xf32>
    %161 = arith.cmpf oge, %153, %160 : vector<32x256xf32>
    %cst_82 = arith.constant 2.000000e-01 : f32
    %162 = vector.broadcast %cst_82 : f32 to vector<32x256xf32>
    %163 = arith.mulf %162, %153 : vector<32x256xf32>
    %164 = arith.select %161, %153, %163 : vector<32x256xi1>, vector<32x256xf32>
    %165 = arith.addf %159, %164 : vector<32x256xf32>
    %c0_83 = arith.constant 0 : index
    %c0_84 = arith.constant 0 : index
    %c0_85 = arith.constant 0 : index
    %166 = vector.load %arg8[%c0_83, %c0_84, %c0_85] : memref<1x32x256xf32, #tpu.memory_space<vmem>>, vector<1x32x256xf32>
    %167 = vector.shape_cast %166 : vector<1x32x256xf32> to vector<32x256xf32>
    %168 = vector.shape_cast %165 : vector<32x256xf32> to vector<1x32x256xf32>
    tpu.vector_store %arg8[%c0_83, %c0_84, %c0_85], %168 {strides = array<i32>} : memref<1x32x256xf32, #tpu.memory_space<vmem>>, vector<1x32x256xf32>,
    return
  }
  func.func @transform_0(%arg0: i32) -> (i32, i32, i32) {
    %c0_i32 = arith.constant 0 : i32
    %c0_i32_0 = arith.constant 0 : i32
    %c0_i32_1 = arith.constant 0 : i32
    return %arg0, %c0_i32, %c0_i32_0 : i32, i32, i32
  }
  func.func @transform_1(%arg0: i32) -> (i32, i32) {
    %c0_i32 = arith.constant 0 : i32
    %c0_i32_0 = arith.constant 0 : i32
    %c0_i32_1 = arith.constant 0 : i32
    return %c0_i32, %c0_i32_0 : i32, i32
  }
  func.func @transform_2(%arg0: i32) -> (i32, i32) {
    %c0_i32 = arith.constant 0 : i32
    %c0_i32_0 = arith.constant 0 : i32
    %c0_i32_1 = arith.constant 0 : i32
    return %c0_i32, %c0_i32_0 : i32, i32
  }
  func.func @transform_3(%arg0: i32) -> (i32, i32, i32) {
    %c0_i32 = arith.constant 0 : i32
    %c0_i32_0 = arith.constant 0 : i32
    %c0_i32_1 = arith.constant 0 : i32
    return %arg0, %c0_i32, %c0_i32_0 : i32, i32, i32
  }
  func.func @transform_4(%arg0: i32) -> (i32, i32, i32) {
    %c0_i32 = arith.constant 0 : i32
    %c0_i32_0 = arith.constant 0 : i32
    %c0_i32_1 = arith.constant 0 : i32
    return %arg0, %c0_i32, %c0_i32_0 : i32, i32, i32
  }
  func.func @transform_5(%arg0: i32) -> (i32, i32, i32) {
    %c0_i32 = arith.constant 0 : i32
    %c0_i32_0 = arith.constant 0 : i32
    %c0_i32_1 = arith.constant 0 : i32
    %c0_i32_2 = arith.constant 0 : i32
    return %c0_i32, %c0_i32_0, %c0_i32_1 : i32, i32, i32
  }
  func.func @transform_6(%arg0: i32) -> (i32, i32) {
    %c0_i32 = arith.constant 0 : i32
    %c0_i32_0 = arith.constant 0 : i32
    %c0_i32_1 = arith.constant 0 : i32
    return %c0_i32, %c0_i32_0 : i32, i32
  }
  func.func @transform_7(%arg0: i32) -> (i32, i32, i32) {
    %c0_i32 = arith.constant 0 : i32
    %c0_i32_0 = arith.constant 0 : i32
    %c0_i32_1 = arith.constant 0 : i32
    return %arg0, %c0_i32, %c0_i32_0 : i32, i32, i32
  }
  func.func @transform_8(%arg0: i32) -> (i32, i32, i32) {
    %c0_i32 = arith.constant 0 : i32
    %c0_i32_0 = arith.constant 0 : i32
    %c0_i32_1 = arith.constant 0 : i32
    return %arg0, %c0_i32, %c0_i32_0 : i32, i32, i32
  }
  func.func @transform_9(%arg0: i32) -> (i32, i32, i32) {
    %c0_i32 = arith.constant 0 : i32
    %c0_i32_0 = arith.constant 0 : i32
    %c0_i32_1 = arith.constant 0 : i32
    return %arg0, %c0_i32, %c0_i32_0 : i32, i32, i32
  }
  func.func @transform_10(%arg0: i32) -> (i32, i32, i32) {
    %c0_i32 = arith.constant 0 : i32
    %c0_i32_0 = arith.constant 0 : i32
    %c0_i32_1 = arith.constant 0 : i32
    return %arg0, %c0_i32, %c0_i32_0 : i32, i32, i32
  }
}

</mosaic_0001>

<bundles_post_ra>
// kernel: assisted_block_forward.1
= control target key start
LH: loop header
LB: loop body
LE: loop exit
PB: predicated region body
PF: predicated region fallthrough
CT: control target
= control target key end

     0   :  { %s3415_s13 = smov 0   ;;  %s4178_s0 = inlined_call_operand.vmem [shape: f32[2,32,256], index: 0, kind: input, shape index: {}]   ;;  %s4179_s1 = inlined_call_operand.vmem [shape: f32[15,32], index: 1, kind: input, shape index: {}]   ;;  %s4180_s2 = inlined_call_operand.vmem [shape: f32[15,1], index: 2, kind: input, shape index: {}]   ;;  %s4181_s3 = inlined_call_operand.vmem [shape: f32[2,8,1], index: 3, kind: input, shape index: {}]   ;;  %s4182_s4 = inlined_call_operand.vmem [shape: f32[2,3,1], index: 4, kind: input, shape index: {}]   ;;  %s4183_s5 = inlined_call_operand.vmem [shape: f32[9,64,15], index: 5, kind: input, shape index: {}]   ;;  %s4184_s6 = inlined_call_operand.vmem [shape: f32[64,1], index: 6, kind: input, shape index: {}]   ;;  %s4185_s7 = inlined_call_operand.vmem [shape: f32[2,32,256], index: 7, kind: output, shape index: {0}]   ;;  %s4186_s8 = inlined_call_operand.vmem [shape: f32[2,15,256], index: 8, kind: output, shape index: {1}]   ;;  %s4187_s9 = inlined_call_operand.vmem [shape: f32[2,8,256], index: 9, kind: output, shape index: {2}]   ;;  %s4188_s10 = inlined_call_operand.vmem [shape: f32[2,8,256], index: 10, kind: output, shape index: {3}]  }
   0x1 LB: > { %s2721_s14 = sadd.s32 4294967295, %s3347_s13   ;;  %p2725_p0 = scmp.ge.s32.totalorder %s3347_s13, 1  ;;  %s3347_s13 = sphi %s3415_s13, %s21_s13  }
   0x2   : > { %p337_p1 = scmp.lt.s32.totalorder %s3347_s13, 3 }
   0x4   : > { %p338_p2 = pnand %p2725_p0, %p337_p1 }
   0x5   : > { %p398_p3 = scmp.lt.s32.totalorder (!%p338_p2), %s2721_s14, 1  ;;  %v3349_v0 = vmov (!%p338_p2), 0.0   ;;  %v441_v1 = vld [vmem:[%s4180_s2] sm:$0xff] (!%p338_p2)  ;;  %v3350_v2 = vmov (!%p338_p2), 0   ;;  %v442_v3 = vld [vmem:[%s4180_s2 + $0x8] sm:$0x7f] (!%p338_p2) }
   0x6   : > { %341 = sbr.rel (%p338_p2) target bundleno = 1109 (0x455), region = 48  ;;  %524 = vmatprep.mubr.f32.mxu0 (!%p338_p2), %v3349_v0  ;;  %652 = vst [vmem:[#allocation2] sm:$0xff] (!%p338_p2), %v3349_v0  ;;  %657 = vst [vmem:[#allocation2 + $0x20] sm:$0x7f] (!%p338_p2), %v3349_v0  ;;  %1618 = vmatprep.mubr.f32.mxu1 (!%p338_p2), %v3349_v0  ;;  %v439_v16 = vld [vmem:[%s4179_s1] sm:$0xff] (!%p338_p2)  ;;  %vm453_vm0 = vcmask (!%p338_p2), 261120  }
   0x7   : > { %658 = vst [vmem:[#allocation2 + $0x28] sm:$0x7f] (!%p338_p2), %v3349_v0  ;;  %659 = vst [vmem:[#allocation2 + $0x30] sm:$0x7f] (!%p338_p2), %v3349_v0  ;;  %3150 = vset.pattern.permute.xlu0 (!%p338_p2), %v3350_v2  ;;  %3151 = vset.pattern.permute.xlu1 (!%p338_p2), %v3350_v2  ;;  %v440_v17 = vld [vmem:[%s4179_s1 + $0x8] sm:$0x7f] (!%p338_p2) }
   0x8   : > { %445 = vperm.xlu0 (!%p338_p2), %3150, %v441_v1   ;;  %vm542_vm1 = vcmask (!%p338_p2), 1046528   ;;  %vm660_vm2 = vcmask (!%p338_p2), 137216   ;;  %vm655_vm3 = vcmask (!%p338_p2), 138240   ;;  %vm639_vm4 = vcmask (!%p338_p2), 1040384   ;;  %s3355_s23 = smov (!%p338_p2), 113   ;;  %s3358_s12 = smov (!%p338_p2), 1  }
   0x9   : > { %661 = vst.msk [vmem:[#allocation2 + $0x38] sm:$0x7f] (!%p338_p2), %vm660_vm2, %v3349_v0  ;;  %vm642_vm5 = vcmask (!%p338_p2), 1042432   ;;  %vm645_vm6 = vcmask (!%p338_p2), 1043456   ;;  %vm3353_vm7 = vmmov (!%p338_p2), 1   ;;  %vm771_vm9 = vcmask (!%p338_p2), 121856  }
   0xa   : > { %656 = vst.msk [vmem:[#allocation2 + $0x18] sm:$0xff] (!%p338_p2), %vm655_vm3, %v3349_v0  ;;  %vm3508_vm8 = vmpackc.low (!%p338_p2), %vm542_vm1, %vm3353_vm7  ;;  %s3359_s15 = smov (!%p338_p2), 111   ;;  %vm1695_vm10 = vcmask (!%p338_p2), 1039360   ;;  %vm2266_vm7 = vcmask (!%p338_p2), 908288  }
   0xc   : > { %450 = vperm.xlu0 (!%p338_p2), %3150, %v442_v3  }
   0xd   : > { %s4208_s14 = smov (!%p398_p3, %s2721_s14), 1 }
   0xe   : > { %s2918_s17 = sshll.u32 %s4208_s14, 6  ;;  %s2921_s27 = sshll.u32 %s4208_s14, 4 }
   0xf   : > { %s3443_s22 = scalar_lea.vmem %s4178_s0, %s2918_s17  ;;  %s430_s30 = scalar_lea.vmem %s4188_s10, %s2921_s27 }
  0x10   : > { %v432_v4 = vld [vmem:[%s3443_s22 + $0x8] sm:$0xff]  ;;  %v434_v5 = vld [vmem:[%s3443_s22 + $0x18] sm:$0xff]  ;;  %v431_v6 = vld [vmem:[%s3443_s22] sm:$0xff]  ;;  %s2728_s11 = sshll.u32 %s4208_s14, 3  ;;  %s2729_s18 = sshll.u32 %s4208_s14, 2 }
  0x11   : > { %v2923_v7 = vpack.c.bf16 %v434_v5, %v432_v4  ;;  %v433_v8 = vld [vmem:[%s3443_s22 + $0x10] sm:$0xff]  ;;  %v436_v9 = vld [vmem:[%s3443_s22 + $0x28] sm:$0xff]  ;;  %v438_v10 = vld [vmem:[%s3443_s22 + $0x38] sm:$0xff]  ;;  %s406_s16 = scalar_lea.vmem %s4181_s3, %s2728_s11  ;;  %s410_s21 = scalar_lea.vmem %s4182_s4, %s2729_s18 }
  0x12   : > { %v2925_v11 = vpack.c.bf16 %v433_v8, %v431_v6  ;;  %v2927_v12 = vpack.c.bf16 %v438_v10, %v436_v9  ;;  %v435_v13 = vld [vmem:[%s3443_s22 + $0x20] sm:$0xff]  ;;  %v437_v14 = vld [vmem:[%s3443_s22 + $0x30] sm:$0xff]  ;;  %s425_s25 = scalar_lea.vmem %s4187_s9, %s2921_s27  ;;  %s2920_s26 = sshll.u32 %s4208_s14, 5 }
  0x13   : > { %2924 = vmatprep.subr.bf16.mxu0 %v2923_v7  ;;  %v2929_v15 = vpack.c.bf16 %v437_v14, %v435_v13  ;;  %v580_v32 = vld [vmem:[%s406_s16] sm:$0xff]  ;;  %s3491_s29 = scalar_lea.vmem %s4186_s8, %s2920_s26  ;;  %s3352_s11 = smov 127  }
  0x14   : > { %2926 = vmatpush1.bf16.msra.mxu0 %v2925_v11  ;;  %v630_v51 = vld [vmem:[%s410_s21] sm:$0x7]  ;;  %s3354_s16 = smov 16   ;;  %s3356_s26 = smov 15  }
  0x15   : > { %2928 = vmatprep.subr.bf16.mxu0 %v2927_v12  ;;  %s4146_s24 = scalar_lea.vmem %s4185_s7, %s2918_s17 }
  0x18   : > { %2930 = vmatpush1.bf16.msra.mxu0 %v2929_v15 }
  0x1b   : > { %2738 = vmatmul.mubr.msk.f32.vlgmr.msra.gmra.mrb[0].mxu0 %vm453_vm0, %v439_v16 }
  0x1c   : > { %530 = vmatprep.mubr.f32.mxu0 %v3349_v0 }
  0x1f   : > { %2739 = vmatmul.mubr.msk.f32.gmra.mrb[2].mxu0 %vm453_vm0, %v440_v17 }
  0x20   : > { %866 = vmatprep.mubr.f32.mxu0 %v3349_v0 }
  0x87   : > { %v446_v18 = vpop.permute.xlu0 %445 }
  0x8b   : > { %v451_v23 = vpop.permute.xlu0 %450 }
  0xee   : > { %v526_v19 = vpop.f32.mrb[0].mxu0 }
  0xef   : > { %v527_v20 = vadd.f32 %v526_v19, %v446_v18  ;;  %v528_v21 = vpop.f32.mrb[1].mxu0 }
  0xf0   : > { %v529_v22 = vadd.f32 %v528_v21, %v446_v18 }
  0xf1   : > { %537 = vst [vmem:[%s430_s30] sm:$0xff] %v527_v20 }
  0xf2   : > { %538 = vst [vmem:[%s430_s30 + $0x8] sm:$0xff] %v529_v22  ;;  %v532_v24 = vpop.f32.mrb[2].mxu0  ;;  %v539_v25 = vmax.f32 %v527_v20, %v529_v22  ;;  %s3351_s30 = smov 17  }
  0xf3   : > { %v533_v26 = vadd.f32 %v532_v24, %v451_v23  ;;  %v534_v27 = vpop.f32.mrb[3].mxu0 }
  0xf4   : > { %v535_v28 = vadd.f32 %v534_v27, %v451_v23  ;;  %540 = vmax.xlane.f32.xlu1 %v539_v25 }
  0xf5   : > { %v543_v29 = vsel %vm542_vm1, %v533_v26, -inf  ;;  %v2740_v52 = vmul.f32 -1.442695, %v533_v26 }
  0xf6   : > { %v544_v30 = vsel %vm542_vm1, %v535_v28, -inf  ;;  %v2741_v53 = vmul.f32 -1.442695, %v535_v28 }
  0xf7   : > { %v545_v31 = vmax.f32 %v543_v29, %v544_v30 }
  0xf9   : > { %546 = vmax.xlane.f32.xlu1 %v545_v31 }
 0x10a   : > { %583 = vperm.xlu1 %3151, %v580_v32  }
 0x181   : > { %v541_v33 = vpop.xlane.xlu1 %540 }
 0x182   : > { %v548_v34 = vsub.f32 %v527_v20, %v541_v33  ;;  %v549_v35 = vsub.f32 %v529_v22, %v541_v33 }
 0x184   : > { %v552_v36 = vmul.f32 1.442695, %v548_v34  ;;  %v554_v37 = vmul.f32 1.442695, %v549_v35 }
 0x186   : > { %3272 = vpow2.f32 %v552_v36  ;;  %v547_v38 = vpop.xlane.xlu1 %546 }
 0x187   : > { %3274 = vpow2.f32 %v554_v37  ;;  %v550_v39 = vsub.f32 %v533_v26, %v547_v38  ;;  %v551_v40 = vsub.f32 %v535_v28, %v547_v38 }
 0x189   : > { %v556_v41 = vmul.f32 1.442695, %v550_v39  ;;  %v558_v42 = vmul.f32 1.442695, %v551_v40 }
 0x18a   : > { %v584_v56 = vpop.permute.xlu1 %583 }
 0x18b   : > { %3276 = vpow2.f32 %v556_v41 }
 0x18c   : > { %3278 = vpow2.f32 %v558_v42 }
 0x18d   : > { %3280 = vpow2.f32 %v2740_v52 }
 0x18e   : > { %3282 = vpow2.f32 %v2741_v53 }
 0x190   : > { %v3273_v43 = vpop.eup %3272 }
 0x191   : > { %v3275_v44 = vpop.eup %3274 }
 0x192   : > { %v560_v45 = vadd.f32 %v3275_v44, %v3273_v43 }
 0x194   : > { %561 = vadd.xlane.f32.xlu0 %v560_v45 }
 0x195   : > { %v3277_v46 = vpop.eup %3276 }
 0x196   : > { %v3279_v47 = vpop.eup %3278  ;;  %v563_v48 = vsel %vm542_vm1, %v3277_v46, 0.0 }
 0x197   : > { %v564_v49 = vsel %vm542_vm1, %v3279_v47, 0.0  ;;  %v3281_v55 = vpop.eup %3280 }
 0x198   : > { %v565_v50 = vadd.f32 %v564_v49, %v563_v48  ;;  %v3283_v57 = vpop.eup %3282  ;;  %v622_v58 = vadd.f32 1.0, %v3281_v55  ;;  %v1676_v48 = vld [vmem:[#allocation2 + $0x38] sm:$0x7f] }
 0x199   : > { %v623_v59 = vadd.f32 1.0, %v3283_v57 }
 0x19a   : > { %566 = vadd.xlane.f32.xlu1 %v565_v50 }
 0x1aa   : > { %633 = vperm.xlu0 %3150, %v630_v51  }
 0x221   : > { %v562_v54 = vpop.xlane.xlu0 %561 }
 0x222   : > { %3284 = vrcp.f32 %v562_v54 }
 0x227   : > { %v567_v60 = vpop.xlane.xlu1 %566 }
 0x228   : > { %3286 = vrcp.f32 %v567_v60 }
 0x229   : > { %3288 = vrcp.f32 %v622_v58  ;;  %v634_v11 = vpop.permute.xlu0 %633 }
 0x22a   : > { %3290 = vrcp.f32 %v623_v59  ;;  %v635_v19 = vrot.slane %v634_v11, 4  ;;  %v1673_v59 = vld [vmem:[#allocation2 + $0x18] sm:$0xff] }
 0x22b   : > { %3292 = vtanh.f32 %v533_v26  ;;  %v2819_v11 = vld [vmem:[%s4183_s5 + $0x138] sm:$0xff] }
 0x22c   : > { %v3285_v61 = vpop.eup %3284  ;;  %3294 = vtanh.f32 %v535_v28 }
 0x22d   : > { %v570_v62 = vmul.f32 %v3285_v61, %v562_v54 }
 0x22f   : > { %v572_v63 = vsub.f32 2.0, %v570_v62 }
 0x231   : > { %v574_v1 = vmul.f32 %v3285_v61, %v572_v63  ;;  %v2794_v61 = vld [vmem:[%s4183_s5 + $0xd0] sm:$0xff] }
 0x232   : > { %v3287_v2 = vpop.eup %3286 }
 0x233   : > { %v576_v3 = vmul.f32 %v3273_v43, %v574_v1  ;;  %v577_v4 = vmul.f32 %v3275_v44, %v574_v1  ;;  %v571_v5 = vmul.f32 %v3287_v2, %v567_v60  ;;  %v3289_v6 = vpop.eup %3288  ;;  %v726_v44 = vld [vmem:[#allocation2 + $0x20] sm:$0x7f] }
 0x234   : > { %v3291_v7 = vpop.eup %3290 }
 0x235   : > { %v586_v8 = vmul.f32 %v584_v56, %v576_v3  ;;  %v587_v9 = vmul.f32 %v584_v56, %v577_v4  ;;  %v573_v10 = vsub.f32 2.0, %v571_v5  ;;  %v3293_v12 = vpop.eup %3292  ;;  %v2814_v3 = vld [vmem:[%s4183_s5 + $0x110] sm:$0xff] }
 0x236   : > { %v3295_v13 = vpop.eup %3294  ;;  %v640_v17 = vsel %vm639_vm4, %v3289_v6, %v3293_v12 }
 0x237   : > { %v588_v14 = vmul.f32 256.0, %v586_v8  ;;  %v589_v15 = vmul.f32 256.0, %v587_v9  ;;  %v575_v16 = vmul.f32 %v3287_v2, %v573_v10  ;;  %v641_v18 = vsel %vm639_vm4, %v3291_v7, %v3295_v13  ;;  %v2816_v8 = vld [vmem:[%s4183_s5 + $0x120] sm:$0xff]  ;;  %v2817_v9 = vld [vmem:[%s4183_s5 + $0x128] sm:$0xff]  ;;  %v2818_v10 = vld [vmem:[%s4183_s5 + $0x130] sm:$0xff] }
 0x238   : > { %v643_v28 = vsel %vm642_vm5, %v640_v17, %v3289_v6  ;;  %v644_v29 = vsel %vm642_vm5, %v641_v18, %v3291_v7  ;;  %v3192_v6 = vpack.i.bf16 %v726_v44, %v3349_v0  ;;  %v2815_v7 = vld [vmem:[%s4183_s5 + $0x118] sm:$0xff]  ;;  %v675_v13 = vld [vmem:[%s4184_s6] sm:$0xff]  ;;  %v681_v18 = vld [vmem:[%s4184_s6 + $0x30] sm:$0xff]  ;;  %vm2090_vm5 = vcmask 916480  }
 0x239   : > { %590 = vst [vmem:[%s425_s25] sm:$0xff] %v588_v14  ;;  %591 = vst [vmem:[%s425_s25 + $0x8] sm:$0xff] %v589_v15  ;;  %v592_v20 = vadd.f32 1e-06, %v588_v14  ;;  %v593_v21 = vadd.f32 1e-06, %v589_v15  ;;  %v578_v22 = vmul.f32 %v3277_v46, %v575_v16  ;;  %v579_v23 = vmul.f32 %v3279_v47, %v575_v16  ;;  %v677_v14 = vld [vmem:[%s4184_s6 + $0x10] sm:$0xff] }
 0x23a   : > { %v3499_v46 = vpack.i.bf16 %v3349_v0, %v726_v44  ;;  %v676_v15 = vld [vmem:[%s4184_s6 + $0x8] sm:$0xff]  ;;  %v679_v16 = vld [vmem:[%s4184_s6 + $0x20] sm:$0xff]  ;;  %v678_v17 = vld [vmem:[%s4184_s6 + $0x18] sm:$0xff] }
 0x23b   : > { %v594_v24 = vrot.slane %v592_v20, 4  ;;  %v600_v25 = vrot.slane %v593_v21, 4  ;;  %v637_v26 = vmul.f32 %v635_v19, %v578_v22  ;;  %v638_v27 = vmul.f32 %v635_v19, %v579_v23  ;;  %v680_v19 = vld [vmem:[%s4184_s6 + $0x28] sm:$0xff] }
 0x23c   : > { %v666_v22 = vlaneseq }
 0x23d   : > { %v595_v30 = vadd.f32 %v594_v24, %v592_v20  ;;  %v601_v31 = vadd.f32 %v600_v25, %v593_v21  ;;  %v646_v32 = vsel %vm645_vm6, %v643_v28, %v637_v26  ;;  %v647_v33 = vsel %vm645_vm6, %v644_v29, %v638_v27 }
 0x23e   : > { %650 = vst [vmem:[%s3491_s29 + $0x10] sm:$0x7f] %v646_v32  ;;  %651 = vst [vmem:[%s3491_s29 + $0x18] sm:$0x7f] %v647_v33  ;;  %v667_v23 = vand.u32 127, %v666_v22  ;;  %vm1324_vm6 = vcmask 7168  }
 0x23f   : > { %664 = vst [vmem:[#allocation2 + $0x28] sm:$0x7f] %v646_v32  ;;  %665 = vst [vmem:[#allocation2 + $0x30] sm:$0x7f] %v647_v33  ;;  %v596_v34 = vrot.slane %v595_v30, 2  ;;  %v602_v35 = vrot.slane %v601_v31, 2 }
 0x240   : > { %v668_v25 = vadd.s32 128, %v667_v23 }
 0x241   : > { %v597_v36 = vadd.f32 %v596_v34, %v595_v30  ;;  %v603_v37 = vadd.f32 %v602_v35, %v601_v31  ;;  %v669_v30 = vand.u32 15, %v667_v23  ;;  %v2755_v35 = vld [vmem:[%s4183_s5 + $0x48] sm:$0xff] }
 0x242   : > { %v670_v27 = vand.u32 15, %v668_v25 }
 0x243   : > { %v598_v38 = vrot.slane %v597_v36, 1  ;;  %v604_v39 = vrot.slane %v603_v37, 1  ;;  %vm3593_vm12 = vcmp.ge.s32.totalorder %v669_v30, 1  ;;  %vm3633_vm2 = vcmp.le.s32.totalorder %v669_v30, 14 }
 0x244   : > { %vm3588_vm11 = vcmp.ge.s32.totalorder %v670_v27, 1  ;;  %vm3598_vm13 = vcmp.le.s32.totalorder %v670_v27, 14  ;;  %vm3629_vm0 = vmpackc.low %vm542_vm1, %vm3593_vm12 }
 0x245   : > { %v599_v40 = vadd.f32 %v598_v38, %v597_v36  ;;  %v605_v41 = vadd.f32 %v604_v39, %v603_v37  ;;  %vm3606_vm14 = vmpackc.low %vm542_vm1, %vm3588_vm11  ;;  %v2857_v37 = vld [vmem:[%s4183_s5 + $0x1b8] sm:$0xff] }
 0x246   : > { %v727_v42 = vld [vmem:[#allocation2 + $0x28] sm:$0x7f]  ;;  %v728_v43 = vld [vmem:[#allocation2 + $0x30] sm:$0x7f]  ;;  %vm3619_vm15 = vmpackc.low %vm542_vm1, %vm3598_vm13 }
 0x247   : > { %v3495_v45 = vpack.i.bf16 %v728_v43, %v727_v42  ;;  %3296 = vrcp.f32 %v599_v40  ;;  %v1675_v47 = vld [vmem:[#allocation2 + $0x30] sm:$0x7f]  ;;  %v1674_v4 = vld [vmem:[#allocation2 + $0x28] sm:$0x7f]  ;;  %vm3653_vm4 = vmpackc.low %vm542_vm1, %vm3633_vm2  ;;  %vm1888_vm1 = vcmask 924672  }
 0x248   : > { %3298 = vrcp.f32 %v605_v41  ;;  %v3502_v49 = vpack.i.bf16 %v1676_v48, %v1675_v47  ;;  %v2756_v47 = vld [vmem:[%s4183_s5 + $0x50] sm:$0xff] }
 0x249   : > { %3153 = vrot.lane.b32.xlu0 %v3495_v45, %s3351_s30 }
 0x24d   : > { %3163 = vrot.lane.b32.xlu0 %v3499_v46, %s3351_s30 }
 0x251   : > { %3168 = vrot.lane.b32.xlu0 %v3502_v49, %s3352_s11  ;;  %v3297_v50 = vpop.eup %3296 }
 0x252   : > { %v3299_v51 = vpop.eup %3298  ;;  %v608_v52 = vmul.f32 %v3297_v50, %v599_v40 }
 0x253   : > { %v609_v53 = vmul.f32 %v3299_v51, %v605_v41 }
 0x254   : > { %v610_v54 = vsub.f32 2.0, %v608_v52  ;;  %v2758_v52 = vld [vmem:[%s4183_s5 + $0x60] sm:$0xff] }
 0x255   : > { %v611_v55 = vsub.f32 2.0, %v609_v53 }
 0x256   : > { %v612_v56 = vmul.f32 %v3297_v50, %v610_v54 }
 0x257   : > { %v613_v57 = vmul.f32 %v3299_v51, %v611_v55 }
 0x258   : > { %v614_v58 = vmul.f32 %v612_v56, %v592_v20  ;;  %v682_v20 = vld [vmem:[%s4184_s6 + $0x38] sm:$0xff] }
 0x259   : > { %v615_v60 = vmul.f32 %v613_v57, %v593_v21 }
 0x25a   : > { %648 = vst [vmem:[%s3491_s29] sm:$0xff] %v614_v58  ;;  %v3512_v62 = vpack.c.bf16 %v727_v42, %v614_v58  ;;  %v3177_v5 = vpack.i.bf16 %v614_v58, %v1674_v4  ;;  %v3237_v12 = vpack.i.bf16 %v1674_v4, %v614_v58  ;;  %v763_v4 = vld [vmem:[%s4183_s5] sm:$0xff] }
 0x25b   : > { %649 = vst [vmem:[%s3491_s29 + $0x8] sm:$0xff] %v615_v60  ;;  %v3157_v63 = vpack.i.bf16 %v615_v60, %v614_v58  ;;  %v3515_v1 = vpack.c.bf16 %v728_v43, %v615_v60  ;;  %v3172_v2 = vpack.i.bf16 %v1673_v59, %v615_v60 }
 0x25d   : > { %3158 = vrot.lane.b32.xlu1 %v3157_v63, %s3351_s30  ;;  %2985 = vmatprep.subr.msk.bf16.mxu1 %vm3508_vm8, %v3515_v1 }
 0x25e   : > { %3173 = vrot.lane.b32.xlu0 %v3172_v2, %s3352_s11  ;;  %2986 = vmatpush1.bf16.msk.msra.mxu1 %vm3508_vm8, %v3512_v62 }
 0x261   : > { %3188 = vrot.lane.b32.xlu1 %v3157_v63, %s3354_s16  ;;  %2824 = vmatmul.mubr.msk.f32.vlgmr.msra.gmra.mrb[0].mxu1 %vm771_vm9, %v2814_v3 }
 0x262   : > { %3178 = vrot.lane.b32.xlu0 %v3177_v5, %s3352_s11  ;;  %1624 = vmatprep.mubr.f32.mxu1 %v3349_v0  ;;  %s3357_s11 = smov 112  }
 0x265   : > { %3193 = vrot.lane.b32.xlu1 %v3192_v6, %s3354_s16  ;;  %2825 = vmatmul.mubr.msk.f32.gmra.mrb[2].mxu1 %vm771_vm9, %v2815_v7 }
 0x266   : > { %3183 = vrot.lane.b32.xlu0 %v3495_v45, %s3354_s16  ;;  %1630 = vmatprep.mubr.f32.mxu1 %v3349_v0 }
 0x269   : > { %3203 = vrot.lane.b32.xlu1 %v3172_v2, %s3355_s23  ;;  %2826 = vmatmul.mubr.msk.f32.gmra.mrb[4].mxu1 %vm771_vm9, %v2816_v8 }
 0x26a   : > { %3198 = vrot.lane.b32.xlu0 %v3502_v49, %s3355_s23  ;;  %1636 = vmatprep.mubr.f32.mxu1 %v3349_v0 }
 0x26d   : > { %3213 = vrot.lane.b32.xlu1 %v3495_v45, %s3356_s26  ;;  %2827 = vmatmul.mubr.msk.f32.gmra.mrb[6].mxu1 %vm771_vm9, %v2817_v9 }
 0x26e   : > { %3208 = vrot.lane.b32.xlu0 %v3177_v5, %s3355_s23  ;;  %1642 = vmatprep.mubr.f32.mxu1 %v3349_v0 }
 0x271   : > { %3223 = vrot.lane.b32.xlu1 %v3499_v46, %s3356_s26  ;;  %2828 = vmatmul.mubr.msk.f32.gmra.mrb[8].mxu1 %vm771_vm9, %v2818_v10 }
 0x272   : > { %3218 = vrot.lane.b32.xlu0 %v3157_v63, %s3356_s26  ;;  %1648 = vmatprep.mubr.f32.mxu1 %v3349_v0 }
 0x275   : > { %3228 = vrot.lane.b32.xlu1 %v3502_v49, %s3357_s11  ;;  %2829 = vmatmul.mubr.msk.f32.gmra.mrb[10].mxu1 %vm771_vm9, %v2819_v11 }
 0x276   : > { %3233 = vrot.lane.b32.xlu0 %v3172_v2, %s3357_s11  ;;  %1811 = vmatprep.mubr.f32.mxu1 %v3349_v0 }
 0x279   : > { %3243 = vrot.lane.b32.xlu1 %v3495_v45, %s3358_s12 }
 0x27a   : > { %3238 = vrot.lane.b32.xlu0 %v3237_v12, %s3357_s11 }
 0x27d   : > { %3253 = vrot.lane.b32.xlu1 %v3499_v46, %s3358_s12 }
 0x27e   : > { %3248 = vrot.lane.b32.xlu0 %v3157_v63, %s3358_s12  ;;  %v2870_v63 = vld [vmem:[%s4183_s5 + $0x1c0] sm:$0xff] }
 0x281   : > { %3263 = vrot.lane.b32.xlu1 %v3172_v2, %s3359_s15 }
 0x282   : > { %3258 = vrot.lane.b32.xlu0 %v3502_v49, %s3359_s15 }
 0x285   : > { %685 = vperm.xlu1 %3151, %v675_v13  }
 0x286   : > { %3268 = vrot.lane.b32.xlu0 %v3177_v5, %s3359_s15 }
 0x289   : > { %695 = vperm.xlu1 %3151, %v677_v14   ;;  %v2872_v14 = vld [vmem:[%s4183_s5 + $0x1d0] sm:$0xff] }
 0x28a   : > { %690 = vperm.xlu0 %3150, %v676_v15  }
 0x28d   : > { %705 = vperm.xlu1 %3151, %v679_v16  }
 0x28e   : > { %700 = vperm.xlu0 %3150, %v678_v17  }
 0x291   : > { %715 = vperm.xlu1 %3151, %v681_v18  }
 0x292   : > { %710 = vperm.xlu0 %3150, %v680_v19   ;;  %v764_v19 = vld [vmem:[%s4183_s5 + $0x8] sm:$0xff] }
 0x296   : > { %720 = vperm.xlu0 %3150, %v682_v20  }
 0x2bb   : > { %v3154_v21 = vpop.permute.xlu0 %3153 }
 0x2bc   : > { %v3156_v28 = vunpack.i.h.bf16 %v3154_v21  ;;  %v3155_v29 = vunpack.i.l.bf16 %v3154_v21 }
 0x2be   : > { %v754_v36 = vsel %vm655_vm3, %v3155_v29, %v3156_v28 }
 0x2bf   : > { %v3164_v24 = vpop.permute.xlu0 %3163  ;;  %v762_v48 = vsel %vm3588_vm11, %v754_v36, 0.0 }
 0x2c0   : > { %v3165_v31 = vunpack.i.l.bf16 %v3164_v24  ;;  %v3166_v34 = vunpack.i.h.bf16 %v3164_v24  ;;  %v2830_v24 = vld [vmem:[%s4183_s5 + $0x140] sm:$0xff] }
 0x2c2   : > { %v753_v38 = vsel %vm655_vm3, %v3165_v31, %v3155_v29 }
 0x2c3   : > { %v3169_v26 = vpop.permute.xlu0 %3168  ;;  %v761_v49 = vsel %vm3593_vm12, %v753_v38, 0.0  ;;  %v2831_v38 = vld [vmem:[%s4183_s5 + $0x148] sm:$0xff] }
 0x2c4   : > { %v3171_v32 = vunpack.i.h.bf16 %v3169_v26  ;;  %v3170_v33 = vunpack.i.l.bf16 %v3169_v26 }
 0x2c6   : > { %v1699_v41 = vsel %vm1695_vm10, %v3170_v33, %v3171_v32 }
 0x2c7   : > { %v1707_v53 = vsel %vm3598_vm13, %v1699_v41, 0.0 }
 0x2cf   : > { %v3159_v39 = vpop.permute.xlu1 %3158 }
 0x2d0   : > { %v3174_v42 = vpop.permute.xlu0 %3173  ;;  %v3161_v43 = vunpack.i.h.bf16 %v3159_v39  ;;  %v3160_v44 = vunpack.i.l.bf16 %v3159_v39 }
 0x2d1   : > { %v3176_v45 = vunpack.i.h.bf16 %v3174_v42  ;;  %v3175_v46 = vunpack.i.l.bf16 %v3174_v42 }
 0x2d2   : > { %v751_v50 = vsel %vm655_vm3, %v3166_v34, %v3160_v44  ;;  %v752_v51 = vsel %vm655_vm3, %v3160_v44, %v3161_v43  ;;  %vm952_vm3 = vcmask 130048  }
 0x2d3   : > { %v1697_v54 = vsel %vm1695_vm10, %v3175_v46, %v3176_v45  ;;  %v2931_v55 = vpack.c.bf16 %v762_v48, %v752_v51  ;;  %v2934_v56 = vpack.c.bf16 %v761_v49, %v751_v50  ;;  %v3189_v57 = vpop.permute.xlu1 %3188  ;;  %v766_v48 = vld [vmem:[%s4183_s5 + $0x18] sm:$0xff] }
 0x2d4   : > { %v2961_v59 = vpack.c.bf16 %v1707_v53, %v1697_v54  ;;  %v3179_v60 = vpop.permute.xlu0 %3178  ;;  %v3191_v7 = vunpack.i.h.bf16 %v3189_v57  ;;  %v3190_v8 = vunpack.i.l.bf16 %v3189_v57  ;;  %v2832_v53 = vld [vmem:[%s4183_s5 + $0x150] sm:$0xff] }
 0x2d5   : > { %v3181_v2 = vunpack.i.h.bf16 %v3179_v60  ;;  %v3180_v3 = vunpack.i.l.bf16 %v3179_v60  ;;  %2933 = vmatprep.subr.msk.bf16.mxu0 %vm3606_vm14, %v2931_v55 }
 0x2d6   : > { %2963 = vmatprep.subr.msk.bf16.mxu1 %vm3619_vm15, %v2961_v59  ;;  %2936 = vmatpush1.bf16.msk.msra.mxu0 %vm3629_vm0, %v2934_v56  ;;  %v954_v20 = vsel %vm952_vm3, %v3190_v8, %v3191_v7 }
 0x2d7   : > { %v1696_v5 = vsel %vm1695_vm10, %v3181_v2, %v3175_v46  ;;  %v1698_v6 = vsel %vm1695_vm10, %v3180_v3, %v3170_v33  ;;  %v3194_v9 = vpop.permute.xlu1 %3193  ;;  %v765_v33 = vld [vmem:[%s4183_s5 + $0x10] sm:$0xff]  ;;  %v767_v2 = vld [vmem:[%s4183_s5 + $0x20] sm:$0xff] }
 0x2d8   : > { %v1706_v10 = vsel %vm3633_vm2, %v1698_v6, 0.0  ;;  %v3184_v11 = vpop.permute.xlu0 %3183  ;;  %v3196_v12 = vunpack.i.h.bf16 %v3194_v9  ;;  %v3195_v13 = vunpack.i.l.bf16 %v3194_v9  ;;  %v2833_v6 = vld [vmem:[%s4183_s5 + $0x158] sm:$0xff] }
 0x2d9   : > { %v2964_v15 = vpack.c.bf16 %v1706_v10, %v1696_v5  ;;  %v3186_v16 = vunpack.i.h.bf16 %v3184_v11  ;;  %v3185_v17 = vunpack.i.l.bf16 %v3184_v11  ;;  %2746 = vmatmul.mubr.msk.f32.vlgmr.msra.gmra.mrb[4].mxu0 %vm771_vm9, %v763_v4 }
 0x2da   : > { %v953_v18 = vsel %vm952_vm3, %v3195_v13, %v3190_v8  ;;  %872 = vmatprep.mubr.f32.mxu0 %v3349_v0 }
 0x2db   : > { %v956_v21 = vsel %vm952_vm3, %v3185_v17, %v3186_v16  ;;  %v955_v22 = vsel %vm952_vm3, %v3196_v12, %v3185_v17  ;;  %2966 = vmatpush1.bf16.msk.msra.mxu1 %vm3653_vm4, %v2964_v15  ;;  %v3204_v23 = vpop.permute.xlu1 %3203  ;;  %v768_v15 = vld [vmem:[%s4183_s5 + $0x28] sm:$0xff] }
 0x2dc   : > { %v2937_v25 = vpack.c.bf16 %v956_v21, %v954_v20  ;;  %v2940_v26 = vpack.c.bf16 %v955_v22, %v953_v18  ;;  %v3199_v27 = vpop.permute.xlu0 %3198  ;;  %v3206_v28 = vunpack.i.h.bf16 %v3204_v23  ;;  %v3205_v29 = vunpack.i.l.bf16 %v3204_v23  ;;  %v2834_v18 = vld [vmem:[%s4183_s5 + $0x160] sm:$0xff]  ;;  %v769_v22 = vld [vmem:[%s4183_s5 + $0x30] sm:$0xff] }
 0x2dd   : > { %v3201_v30 = vunpack.i.h.bf16 %v3199_v27  ;;  %v3200_v31 = vunpack.i.l.bf16 %v3199_v27  ;;  %2747 = vmatmul.mubr.msk.f32.gmra.mrb[6].mxu0 %vm771_vm9, %v764_v19 }
 0x2de   : > { %v1890_v32 = vsel %vm1888_vm1, %v3205_v29, %v3206_v28  ;;  %2939 = vmatprep.subr.msk.bf16.mxu0 %vm3508_vm8, %v2937_v25  ;;  %2842 = vmatmul.mubr.msk.f32.vlgmr.msra.gmra.mrb[12].mxu1 %vm771_vm9, %v2830_v24  ;;  %v2835_v24 = vld [vmem:[%s4183_s5 + $0x168] sm:$0xff] }
 0x2df   : > { %v1892_v34 = vsel %vm1888_vm1, %v3200_v31, %v3201_v30  ;;  %2942 = vmatpush1.bf16.msk.msra.mxu0 %vm3508_vm8, %v2940_v26  ;;  %v3678_v36 = vpop.permute.xlu1 %3213  ;;  %878 = vmatprep.mubr.f32.mxu0 %v3349_v0 }
 0x2e0   : > { %v1900_v39 = vsel %vm3588_vm11, %v1892_v34, 0.0  ;;  %v3209_v41 = vpop.permute.xlu0 %3208  ;;  %v3216_v42 = vunpack.i.h.bf16 %v3678_v36  ;;  %v3215_v43 = vunpack.i.l.bf16 %v3678_v36  ;;  %1817 = vmatprep.mubr.f32.mxu1 %v3349_v0 }
 0x2e1   : > { %v2967_v44 = vpack.c.bf16 %v1900_v39, %v1890_v32  ;;  %v3211_v45 = vunpack.i.h.bf16 %v3209_v41  ;;  %v3210_v46 = vunpack.i.l.bf16 %v3209_v41  ;;  %2748 = vmatmul.mubr.msk.f32.gmra.mrb[8].mxu0 %vm771_vm9, %v765_v33  ;;  %v770_v32 = vld [vmem:[%s4183_s5 + $0x38] sm:$0xff]  ;;  %v2836_v33 = vld [vmem:[%s4183_s5 + $0x170] sm:$0xff] }
 0x2e2   : > { %2843 = vmatmul.mubr.msk.f32.gmra.mrb[14].mxu1 %vm771_vm9, %v2831_v38  ;;  %884 = vmatprep.mubr.f32.mxu0 %v3349_v0  ;;  %v1135_v55 = vsel %vm771_vm9, %v3215_v43, %v3216_v42 }
 0x2e3   : > { %v1889_v49 = vsel %vm1888_vm1, %v3211_v45, %v3205_v29  ;;  %v1891_v50 = vsel %vm1888_vm1, %v3210_v46, %v3200_v31  ;;  %2969 = vmatprep.subr.msk.bf16.mxu1 %vm3606_vm14, %v2967_v44  ;;  %v3699_v51 = vpop.permute.xlu1 %3223  ;;  %1823 = vmatprep.mubr.f32.mxu1 %v3349_v0  ;;  %v1143_v3 = vsel %vm3598_vm13, %v1135_v55, 0.0 }
 0x2e4   : > { %v1899_v54 = vsel %vm3593_vm12, %v1891_v50, 0.0  ;;  %v3219_v56 = vpop.permute.xlu0 %3218  ;;  %v3225_v21 = vunpack.i.l.bf16 %v3699_v51  ;;  %v3226_v25 = vunpack.i.h.bf16 %v3699_v51  ;;  %v2837_v51 = vld [vmem:[%s4183_s5 + $0x178] sm:$0xff] }
 0x2e5   : > { %v2970_v57 = vpack.c.bf16 %v1899_v54, %v1889_v49  ;;  %v3221_v59 = vunpack.i.h.bf16 %v3219_v56  ;;  %v3220_v60 = vunpack.i.l.bf16 %v3219_v56  ;;  %2749 = vmatmul.mubr.msk.f32.gmra.mrb[10].mxu0 %vm771_vm9, %v766_v48  ;;  %v2754_v48 = vld [vmem:[%s4183_s5 + $0x40] sm:$0xff] }
 0x2e6   : > { %2844 = vmatmul.mubr.msk.f32.gmra.mrb[0].mxu1 %vm771_vm9, %v2832_v53  ;;  %890 = vmatprep.mubr.f32.mxu0 %v3349_v0  ;;  %v1134_v29 = vsel %vm771_vm9, %v3225_v21, %v3215_v43  ;;  %v2856_v21 = vld [vmem:[%s4183_s5 + $0x1b0] sm:$0xff] }
 0x2e7   : > { %v1133_v4 = vsel %vm771_vm9, %v3220_v60, %v3221_v59  ;;  %2972 = vmatpush1.bf16.msk.msra.mxu1 %vm3629_vm0, %v2970_v57  ;;  %v3721_v5 = vpop.permute.xlu1 %3228  ;;  %1829 = vmatprep.mubr.f32.mxu1 %v3349_v0  ;;  %v1132_v34 = vsel %vm771_vm9, %v3226_v25, %v3220_v60  ;;  %v1142_v39 = vsel %vm3633_vm2, %v1134_v29, 0.0  ;;  %v2773_v29 = vld [vmem:[%s4183_s5 + $0x88] sm:$0xff] }
 0x2e8   : > { %v2943_v7 = vpack.c.bf16 %v1143_v3, %v1133_v4  ;;  %v3727_v8 = vpop.permute.xlu0 %3233  ;;  %v3231_v9 = vunpack.i.h.bf16 %v3721_v5  ;;  %v3230_v10 = vunpack.i.l.bf16 %v3721_v5  ;;  %v2946_v53 = vpack.c.bf16 %v1142_v39, %v1132_v34  ;;  %v2850_v3 = vld [vmem:[%s4183_s5 + $0x180] sm:$0xff]  ;;  %v2851_v5 = vld [vmem:[%s4183_s5 + $0x188] sm:$0xff] }
 0x2e9   : > { %v3236_v11 = vunpack.i.h.bf16 %v3727_v8  ;;  %v3235_v12 = vunpack.i.l.bf16 %v3727_v8  ;;  %2750 = vmatmul.mubr.msk.f32.gmra.mrb[12].mxu0 %vm771_vm9, %v767_v2  ;;  %v2853_v8 = vld [vmem:[%s4183_s5 + $0x198] sm:$0xff]  ;;  %v2777_v34 = vld [vmem:[%s4183_s5 + $0xa8] sm:$0xff] }
 0x2ea   : > { %v2094_v13 = vsel %vm2090_vm5, %v3230_v10, %v3231_v9  ;;  %2945 = vmatprep.subr.msk.bf16.mxu0 %vm3619_vm15, %v2943_v7  ;;  %2845 = vmatmul.mubr.msk.f32.gmra.mrb[2].mxu1 %vm771_vm9, %v2833_v6  ;;  %v2757_v6 = vld [vmem:[%s4183_s5 + $0x58] sm:$0xff]  ;;  %v2852_v7 = vld [vmem:[%s4183_s5 + $0x190] sm:$0xff]  ;;  %v2759_v9 = vld [vmem:[%s4183_s5 + $0x68] sm:$0xff] }
 0x2eb   : > { %v2092_v16 = vsel %vm2090_vm5, %v3235_v12, %v3236_v11  ;;  %v3744_v17 = vpop.permute.xlu1 %3243  ;;  %896 = vmatprep.mubr.f32.mxu0 %v3349_v0  ;;  %1835 = vmatprep.mubr.f32.mxu1 %v3349_v0  ;;  %v2875_v39 = vld [vmem:[%s4183_s5 + $0x1e8] sm:$0xff] }
 0x2ec   : > { %v2973_v19 = vpack.c.bf16 %v2094_v13, %v2092_v16  ;;  %v3239_v20 = vpop.permute.xlu0 %3238  ;;  %v3246_v27 = vunpack.i.h.bf16 %v3744_v17  ;;  %v3245_v28 = vunpack.i.l.bf16 %v3744_v17  ;;  %v3892_v13 = vld [vmem:[#allocation2] sm:$0xff] }
 0x2ed   : > { %2751 = vmatmul.mubr.msk.f32.gmra.mrb[14].mxu0 %vm771_vm9, %v768_v15  ;;  %v3241_v44 = vunpack.i.h.bf16 %v3239_v20  ;;  %v3240_v45 = vunpack.i.l.bf16 %v3239_v20  ;;  %v2855_v15 = vld [vmem:[%s4183_s5 + $0x1a8] sm:$0xff] }
 0x2ee   : > { %2846 = vmatmul.mubr.msk.f32.gmra.mrb[4].mxu1 %vm771_vm9, %v2834_v18  ;;  %2975 = vmatprep.subr.msk.bf16.mxu1 %vm3508_vm8, %v2973_v19  ;;  %v1328_v41 = vsel %vm1324_vm6, %v3245_v28, %v3246_v27  ;;  %v2761_v19 = vld [vmem:[%s4183_s5 + $0x78] sm:$0xff] }
 0x2ef   : > { %v3759_v23 = vpop.permute.xlu1 %3253  ;;  %902 = vmatprep.mubr.f32.mxu0 %v3349_v0  ;;  %1841 = vmatprep.mubr.f32.mxu1 %v3349_v0  ;;  %v1336_v54 = vsel %vm3588_vm11, %v1328_v41, 0.0  ;;  %v2091_v57 = vsel %vm2090_vm5, %v3240_v45, %v3235_v12  ;;  %v2093_v59 = vsel %vm2090_vm5, %v3241_v44, %v3230_v10  ;;  %v2854_v10 = vld [vmem:[%s4183_s5 + $0x1a0] sm:$0xff]  ;;  %v2760_v12 = vld [vmem:[%s4183_s5 + $0x70] sm:$0xff]  ;;  %v2779_v41 = vld [vmem:[%s4183_s5 + $0xb8] sm:$0xff] }
 0x2f0   : > { %v3767_v26 = vpop.permute.xlu0 %3248  ;;  %v2976_v4 = vpack.c.bf16 %v2093_v59, %v2091_v57  ;;  %v3255_v11 = vunpack.i.l.bf16 %v3759_v23  ;;  %v3256_v18 = vunpack.i.h.bf16 %v3759_v23  ;;  %v2877_v44 = vld [vmem:[%s4183_s5 + $0x1f8] sm:$0xff]  ;;  %v2793_v45 = vld [vmem:[%s4183_s5 + $0xc8] sm:$0xff]  ;;  %v2894_v59 = vld [vmem:[%s4183_s5 + $0x230] sm:$0xff] }
 0x2f1   : > { %2752 = vmatmul.mubr.msk.f32.gmra.mrb[16].mxu0 %vm771_vm9, %v769_v22  ;;  %v3251_v30 = vunpack.i.h.bf16 %v3767_v26  ;;  %v3250_v31 = vunpack.i.l.bf16 %v3767_v26  ;;  %v2799_v57 = vld [vmem:[%s4183_s5 + $0xf8] sm:$0xff] }
 0x2f2   : > { %2847 = vmatmul.mubr.msk.f32.gmra.mrb[6].mxu1 %vm771_vm9, %v2835_v24  ;;  %908 = vmatprep.mubr.f32.mxu0 %v3349_v0  ;;  %v2772_v24 = vld [vmem:[%s4183_s5 + $0x80] sm:$0xff] }
 0x2f3   : > { %1847 = vmatprep.mubr.f32.mxu1 %v3349_v0  ;;  %v3789_v38 = vpop.permute.xlu1 %3263  ;;  %v1326_v46 = vsel %vm1324_vm6, %v3250_v31, %v3251_v30  ;;  %v1325_v17 = vsel %vm1324_vm6, %v3256_v18, %v3250_v31  ;;  %v2774_v30 = vld [vmem:[%s4183_s5 + $0x90] sm:$0xff]  ;;  %v2775_v31 = vld [vmem:[%s4183_s5 + $0x98] sm:$0xff] }
 0x2f4   : > { %v3787_v36 = vpop.permute.xlu0 %3258  ;;  %v3266_v49 = vunpack.i.h.bf16 %v3789_v38  ;;  %v3265_v50 = vunpack.i.l.bf16 %v3789_v38  ;;  %v2949_v56 = vpack.c.bf16 %v1336_v54, %v1326_v46  ;;  %v2778_v38 = vld [vmem:[%s4183_s5 + $0xb0] sm:$0xff]  ;;  %v2888_v46 = vld [vmem:[%s4183_s5 + $0x200] sm:$0xff] }
 0x2f5   : > { %v3261_v42 = vunpack.i.h.bf16 %v3787_v36  ;;  %v3260_v43 = vunpack.i.l.bf16 %v3787_v36  ;;  %2753 = vmatmul.mubr.msk.f32.gmra.mrb[18].mxu0 %vm771_vm9, %v770_v32  ;;  %v2776_v32 = vld [vmem:[%s4183_s5 + $0xa0] sm:$0xff] }
 0x2f6   : > { %2848 = vmatmul.mubr.msk.f32.gmra.mrb[8].mxu1 %vm771_vm9, %v2836_v33  ;;  %1051 = vmatprep.mubr.f32.mxu0 %v3349_v0  ;;  %v2268_v2 = vsel %vm2266_vm7, %v3265_v50, %v3266_v49  ;;  %v2873_v33 = vld [vmem:[%s4183_s5 + $0x1d8] sm:$0xff]  ;;  %v2874_v36 = vld [vmem:[%s4183_s5 + $0x1e0] sm:$0xff]  ;;  %v2890_v49 = vld [vmem:[%s4183_s5 + $0x210] sm:$0xff] }
 0x2f7   : > { %1853 = vmatprep.mubr.f32.mxu1 %v3349_v0  ;;  %v2270_v55 = vsel %vm2266_vm7, %v3260_v43, %v3261_v42  ;;  %v2876_v42 = vld [vmem:[%s4183_s5 + $0x1f0] sm:$0xff]  ;;  %v2892_v54 = vld [vmem:[%s4183_s5 + $0x220] sm:$0xff] }
 0x2f8   : > { %v2278_v60 = vsel %vm3598_vm13, %v2270_v55, 0.0  ;;  %v3269_v16 = vpop.permute.xlu0 %3268  ;;  %v2798_v55 = vld [vmem:[%s4183_s5 + $0xf0] sm:$0xff] }
 0x2f9   : > { %2764 = vmatmul.mubr.msk.f32.vlgmr.msra.gmra.mrb[4].mxu0 %vm771_vm9, %v2754_v48  ;;  %v2979_v40 = vpack.c.bf16 %v2278_v60, %v2268_v2  ;;  %v3270_v20 = vunpack.i.l.bf16 %v3269_v16  ;;  %v3271_v23 = vunpack.i.h.bf16 %v3269_v16  ;;  %v2795_v48 = vld [vmem:[%s4183_s5 + $0xd8] sm:$0xff]  ;;  %v2813_v2 = vld [vmem:[%s4183_s5 + $0x108] sm:$0xff] }
 0x2fa   : > { %2948 = vmatpush1.bf16.msk.msra.mxu0 %vm3653_vm4, %v2946_v53  ;;  %2849 = vmatmul.mubr.msk.f32.gmra.mrb[10].mxu1 %vm771_vm9, %v2837_v51  ;;  %v2891_v51 = vld [vmem:[%s4183_s5 + $0x218] sm:$0xff]  ;;  %v2797_v53 = vld [vmem:[%s4183_s5 + $0xe8] sm:$0xff] }
 0x2fb   : > { %2951 = vmatprep.subr.msk.bf16.mxu0 %vm3606_vm14, %v2949_v56  ;;  %1057 = vmatprep.mubr.f32.mxu0 %v3349_v0  ;;  %v2269_v25 = vsel %vm2266_vm7, %v3270_v20, %v3260_v43  ;;  %v2267_v27 = vsel %vm2266_vm7, %v3271_v23, %v3265_v50  ;;  %v2792_v43 = vld [vmem:[%s4183_s5 + $0xc0] sm:$0xff]  ;;  %v2893_v56 = vld [vmem:[%s4183_s5 + $0x228] sm:$0xff]  ;;  %v2895_v60 = vld [vmem:[%s4183_s5 + $0x238] sm:$0xff] }
 0x2fc   : > { %2004 = vmatprep.mubr.f32.mxu1 %v3349_v0  ;;  %v2796_v50 = vld [vmem:[%s4183_s5 + $0xe0] sm:$0xff] }
 0x2fd   : > { %2765 = vmatmul.mubr.msk.f32.gmra.mrb[6].mxu0 %vm771_vm9, %v2755_v35  ;;  %v2812_v35 = vld [vmem:[%s4183_s5 + $0x100] sm:$0xff] }
 0x2fe   : > { %2862 = vmatmul.mubr.msk.f32.vlgmr.msra.gmra.mrb[12].mxu1 %vm771_vm9, %v2850_v3  ;;  %1063 = vmatprep.mubr.f32.mxu0 %v3349_v0 }
 0x2ff   : > { %2978 = vmatpush1.bf16.msk.msra.mxu1 %vm3508_vm8, %v2976_v4  ;;  %2010 = vmatprep.mubr.f32.mxu1 %v3349_v0 }
 0x300   : > { %2981 = vmatprep.subr.msk.bf16.mxu1 %vm3619_vm15, %v2979_v40 }
 0x301   : > { %2766 = vmatmul.mubr.msk.f32.gmra.mrb[8].mxu0 %vm771_vm9, %v2756_v47 }
 0x302   : > { %2863 = vmatmul.mubr.msk.f32.gmra.mrb[14].mxu1 %vm771_vm9, %v2851_v5  ;;  %1069 = vmatprep.mubr.f32.mxu0 %v3349_v0 }
 0x303   : > { %2016 = vmatprep.mubr.f32.mxu1 %v3349_v0 }
 0x304   : > { %v4112_v3 = vpop.permute.xlu1 %685 }
 0x305   : > { %2767 = vmatmul.mubr.msk.f32.gmra.mrb[10].mxu0 %vm771_vm9, %v2757_v6 }
 0x306   : > { %2864 = vmatmul.mubr.msk.f32.gmra.mrb[0].mxu1 %vm771_vm9, %v2852_v7  ;;  %1075 = vmatprep.mubr.f32.mxu0 %v3349_v0 }
 0x307   : > { %2022 = vmatprep.mubr.f32.mxu1 %v3349_v0 }
 0x309   : > { %2768 = vmatmul.mubr.msk.f32.gmra.mrb[12].mxu0 %vm771_vm9, %v2758_v52  ;;  %v4118_v47 = vpop.permute.xlu0 %690 }
 0x30a   : > { %2865 = vmatmul.mubr.msk.f32.gmra.mrb[2].mxu1 %vm771_vm9, %v2853_v8  ;;  %1081 = vmatprep.mubr.f32.mxu0 %v3349_v0  ;;  %v696_v8 = vpop.permute.xlu1 %695 }
 0x30b   : > { %2028 = vmatprep.mubr.f32.mxu1 %v3349_v0 }
 0x30d   : > { %2769 = vmatmul.mubr.msk.f32.gmra.mrb[14].mxu0 %vm771_vm9, %v2759_v9  ;;  %v701_v18 = vpop.permute.xlu0 %700 }
 0x30e   : > { %2866 = vmatmul.mubr.msk.f32.gmra.mrb[4].mxu1 %vm771_vm9, %v2854_v10  ;;  %1087 = vmatprep.mubr.f32.mxu0 %v3349_v0  ;;  %v1327_v0 = vsel %vm1324_vm6, %v3255_v11, %v3245_v28  ;;  %v2277_v28 = vsel %vm3633_vm2, %v2269_v25, 0.0 }
 0x30f   : > { %2034 = vmatprep.mubr.f32.mxu1 %v3892_v13  ;;  %v1335_v22 = vsel %vm3593_vm12, %v1327_v0, 0.0  ;;  %v2982_v58 = vpack.c.bf16 %v2277_v28, %v2267_v27 }
 0x310   : > { %v2952_v26 = vpack.c.bf16 %v1335_v22, %v1325_v17 }
 0x311   : > { %2770 = vmatmul.mubr.msk.f32.gmra.mrb[16].mxu0 %vm771_vm9, %v2760_v12 }
 0x312   : > { %2867 = vmatmul.mubr.msk.f32.gmra.mrb[6].mxu1 %vm771_vm9, %v2855_v15  ;;  %1093 = vmatprep.mubr.f32.mxu0 %v3892_v13 }
 0x313   : > { %2040 = vmatprep.mubr.f32.mxu1 %v3892_v13 }
 0x315   : > { %2771 = vmatmul.mubr.msk.f32.gmra.mrb[18].mxu0 %vm771_vm9, %v2761_v19 }
 0x316   : > { %2868 = vmatmul.mubr.msk.f32.gmra.mrb[8].mxu1 %vm771_vm9, %v2856_v21  ;;  %1247 = vmatprep.mubr.f32.mxu0 %v3892_v13 }
 0x317   : > { %2046 = vmatprep.mubr.f32.mxu1 %v3892_v13 }
 0x319   : > { %2784 = vmatmul.mubr.msk.f32.vlgmr.msra.gmra.mrb[4].mxu0 %vm771_vm9, %v2772_v24 }
 0x31a   : > { %2954 = vmatpush1.bf16.msk.msra.mxu0 %vm3629_vm0, %v2952_v26  ;;  %2869 = vmatmul.mubr.msk.f32.gmra.mrb[10].mxu1 %vm771_vm9, %v2857_v37  ;;  %v706_v26 = vpop.permute.xlu1 %705 }
 0x31b   : > { %2957 = vmatprep.subr.msk.bf16.mxu0 %vm3508_vm8, %v3515_v1  ;;  %1253 = vmatprep.mubr.f32.mxu0 %v3892_v13  ;;  %v2871_v1 = vld [vmem:[%s4183_s5 + $0x1c8] sm:$0xff] }
 0x31c   : > { %2189 = vmatprep.mubr.f32.mxu1 %v3892_v13 }
 0x31d   : > { %2785 = vmatmul.mubr.msk.f32.gmra.mrb[6].mxu0 %vm771_vm9, %v2773_v29 }
 0x31e   : > { %2880 = vmatmul.mubr.msk.f32.vlgmr.msra.gmra.mrb[12].mxu1 %vm771_vm9, %v2870_v63  ;;  %1259 = vmatprep.mubr.f32.mxu0 %v3892_v13 }
 0x31f   : > { %2984 = vmatpush1.bf16.msk.msra.mxu1 %vm3653_vm4, %v2982_v58  ;;  %2195 = vmatprep.mubr.f32.mxu1 %v3892_v13 }
 0x321   : > { %2786 = vmatmul.mubr.msk.f32.gmra.mrb[8].mxu0 %vm771_vm9, %v2774_v30 }
 0x322   : > { %2881 = vmatmul.mubr.msk.f32.gmra.mrb[14].mxu1 %vm771_vm9, %v2871_v1  ;;  %1265 = vmatprep.mubr.f32.mxu0 %v3892_v13 }
 0x323   : > { %2201 = vmatprep.mubr.f32.mxu1 %v3892_v13 }
 0x325   : > { %2787 = vmatmul.mubr.msk.f32.gmra.mrb[10].mxu0 %vm771_vm9, %v2775_v31 }
 0x326   : > { %2882 = vmatmul.mubr.msk.f32.gmra.mrb[0].mxu1 %vm771_vm9, %v2872_v14  ;;  %1271 = vmatprep.mubr.f32.mxu0 %v3892_v13 }
 0x327   : > { %2207 = vmatprep.mubr.f32.mxu1 %v3892_v13 }
 0x329   : > { %2788 = vmatmul.mubr.msk.f32.gmra.mrb[12].mxu0 %vm771_vm9, %v2776_v32 }
 0x32a   : > { %2883 = vmatmul.mubr.msk.f32.gmra.mrb[2].mxu1 %vm771_vm9, %v2873_v33  ;;  %1277 = vmatprep.mubr.f32.mxu0 %v3892_v13  ;;  %v711_v33 = vpop.permute.xlu0 %710 }
 0x32b   : > { %2213 = vmatprep.mubr.f32.mxu1 %v3892_v13 }
 0x32d   : > { %2789 = vmatmul.mubr.msk.f32.gmra.mrb[14].mxu0 %vm771_vm9, %v2777_v34 }
 0x32e   : > { %2884 = vmatmul.mubr.msk.f32.gmra.mrb[4].mxu1 %vm771_vm9, %v2874_v36  ;;  %1283 = vmatprep.mubr.f32.mxu0 %v3892_v13 }
 0x32f   : > { %2219 = vmatprep.mubr.f32.mxu1 %v3892_v13 }
 0x331   : > { %2790 = vmatmul.mubr.msk.f32.gmra.mrb[16].mxu0 %vm771_vm9, %v2778_v38 }
 0x332   : > { %2885 = vmatmul.mubr.msk.f32.gmra.mrb[6].mxu1 %vm771_vm9, %v2875_v39  ;;  %1289 = vmatprep.mubr.f32.mxu0 %v3892_v13 }
 0x333   : > { %2225 = vmatprep.mubr.f32.mxu1 %v3892_v13 }
 0x335   : > { %2791 = vmatmul.mubr.msk.f32.gmra.mrb[18].mxu0 %vm771_vm9, %v2779_v41 }
 0x336   : > { %2886 = vmatmul.mubr.msk.f32.gmra.mrb[8].mxu1 %vm771_vm9, %v2876_v42  ;;  %1440 = vmatprep.mubr.f32.mxu0 %v3892_v13 }
 0x337   : > { %2231 = vmatprep.mubr.f32.mxu1 %v3892_v13 }
 0x339   : > { %2804 = vmatmul.mubr.msk.f32.vlgmr.msra.gmra.mrb[4].mxu0 %vm771_vm9, %v2792_v43 }
 0x33a   : > { %2960 = vmatpush1.bf16.msk.msra.mxu0 %vm3508_vm8, %v3512_v62  ;;  %2887 = vmatmul.mubr.msk.f32.gmra.mrb[10].mxu1 %vm771_vm9, %v2877_v44  ;;  %v2889_v62 = vld [vmem:[%s4183_s5 + $0x208] sm:$0xff] }
 0x33b   : > { %1446 = vmatprep.mubr.f32.mxu0 %v3892_v13  ;;  %2382 = vmatprep.mubr.f32.mxu1 %v3892_v13 }
 0x33d   : > { %2805 = vmatmul.mubr.msk.f32.gmra.mrb[6].mxu0 %vm771_vm9, %v2793_v45  ;;  %v716_v45 = vpop.permute.xlu1 %715 }
 0x33e   : > { %2900 = vmatmul.mubr.msk.f32.vlgmr.msra.gmra.mrb[12].mxu1 %vm771_vm9, %v2888_v46  ;;  %1452 = vmatprep.mubr.f32.mxu0 %v3892_v13 }
 0x33f   : > { %2388 = vmatprep.mubr.f32.mxu1 %v3892_v13 }
 0x341   : > { %2806 = vmatmul.mubr.msk.f32.gmra.mrb[8].mxu0 %vm771_vm9, %v2794_v61 }
 0x342   : > { %2901 = vmatmul.mubr.msk.f32.gmra.mrb[14].mxu1 %vm771_vm9, %v2889_v62  ;;  %1458 = vmatprep.mubr.f32.mxu0 %v3892_v13 }
 0x343   : > { %2394 = vmatprep.mubr.f32.mxu1 %v3892_v13 }
 0x345   : > { %2807 = vmatmul.mubr.msk.f32.gmra.mrb[10].mxu0 %vm771_vm9, %v2795_v48 }
 0x346   : > { %2902 = vmatmul.mubr.msk.f32.gmra.mrb[0].mxu1 %vm771_vm9, %v2890_v49  ;;  %1464 = vmatprep.mubr.f32.mxu0 %v3892_v13 }
 0x347   : > { %2400 = vmatprep.mubr.f32.mxu1 %v3892_v13 }
 0x349   : > { %2808 = vmatmul.mubr.msk.f32.gmra.mrb[12].mxu0 %vm771_vm9, %v2796_v50 }
 0x34a   : > { %2903 = vmatmul.mubr.msk.f32.gmra.mrb[2].mxu1 %vm771_vm9, %v2891_v51  ;;  %1470 = vmatprep.mubr.f32.mxu0 %v3892_v13 }
 0x34b   : > { %2406 = vmatprep.mubr.f32.mxu1 %v3892_v13 }
 0x34d   : > { %2809 = vmatmul.mubr.msk.f32.gmra.mrb[14].mxu0 %vm771_vm9, %v2797_v53 }
 0x34e   : > { %2904 = vmatmul.mubr.msk.f32.gmra.mrb[4].mxu1 %vm771_vm9, %v2892_v54  ;;  %1476 = vmatprep.mubr.f32.mxu0 %v3892_v13 }
 0x34f   : > { %2412 = vmatprep.mubr.f32.mxu1 %v3892_v13 }
 0x351   : > { %2810 = vmatmul.mubr.msk.f32.gmra.mrb[16].mxu0 %vm771_vm9, %v2798_v55 }
 0x352   : > { %2905 = vmatmul.mubr.msk.f32.gmra.mrb[6].mxu1 %vm771_vm9, %v2893_v56  ;;  %1482 = vmatprep.mubr.f32.mxu0 %v3892_v13 }
 0x353   : > { %2418 = vmatprep.mubr.f32.mxu1 %v3892_v13 }
 0x355   : > { %2811 = vmatmul.mubr.msk.f32.gmra.mrb[18].mxu0 %vm771_vm9, %v2799_v57 }
 0x356   : > { %2906 = vmatmul.mubr.msk.f32.gmra.mrb[8].mxu1 %vm771_vm9, %v2894_v59  ;;  %1606 = vmatprep.mubr.f32.mxu0 %v3892_v13  ;;  %v721_v59 = vpop.permute.xlu0 %720 }
 0x357   : > { %2424 = vmatprep.mubr.f32.mxu1 %v3892_v13 }
 0x359   : > { %2822 = vmatmul.mubr.msk.f32.vlgmr.msra.gmra.mrb[4].mxu0 %vm771_vm9, %v2812_v35 }
 0x35a   : > { %2907 = vmatmul.mubr.msk.f32.gmra.mrb[10].mxu1 %vm771_vm9, %v2895_v60  ;;  %1612 = vmatprep.mubr.f32.mxu0 %v3892_v13 }
 0x35d   : > { %2823 = vmatmul.mubr.msk.f32.gmra.mrb[6].mxu0 %vm771_vm9, %v2813_v2 }
 0x411   : > { %v4114_v4 = vpop.f32.mrb[12].mxu1 }
 0x412   : > { %v4116_v40 = vpop.f32.mrb[13].mxu1 }
 0x414   : > { %v1454_v5 = vpop.f32.mrb[8].mxu0 }
 0x415   : > { %v4120_v6 = vpop.f32.mrb[14].mxu1  ;;  %v1456_v7 = vpop.f32.mrb[9].mxu0  ;;  %v2995_v9 = vadd.f32 %v1454_v5, %v696_v8 }
 0x416   : > { %v4122_v52 = vpop.f32.mrb[15].mxu1  ;;  %v2997_v11 = vadd.f32 %v1456_v7, %v696_v8 }
 0x418   : > { %v1460_v10 = vpop.f32.mrb[10].mxu0 }
 0x419   : > { %v2396_v12 = vpop.f32.mrb[0].mxu1  ;;  %v1462_v13 = vpop.f32.mrb[11].mxu0  ;;  %v2999_v19 = vadd.f32 %v1460_v10, %v701_v18 }
 0x41a   : > { %v2996_v15 = vadd.f32 %v2995_v9, %v2396_v12  ;;  %v2398_v16 = vpop.f32.mrb[1].mxu1  ;;  %v3001_v17 = vadd.f32 %v1462_v13, %v701_v18 }
 0x41b   : > { %v2998_v0 = vadd.f32 %v2997_v11, %v2398_v16 }
 0x41c   : > { %v2912_v20 = vmul.f32 -1.442695, %v2996_v15  ;;  %v1466_v21 = vpop.f32.mrb[12].mxu0 }
 0x41d   : > { %v2913_v22 = vmul.f32 -1.442695, %v2998_v0  ;;  %v2402_v23 = vpop.f32.mrb[2].mxu1  ;;  %v1468_v24 = vpop.f32.mrb[13].mxu0  ;;  %v3003_v28 = vadd.f32 %v1466_v21, %v706_v26 }
 0x41e   : > { %3300 = vpow2.f32 %v2912_v20  ;;  %v3000_v25 = vadd.f32 %v2999_v19, %v2402_v23  ;;  %v2404_v37 = vpop.f32.mrb[3].mxu1  ;;  %v3005_v58 = vadd.f32 %v1468_v24, %v706_v26 }
 0x41f   : > { %3302 = vpow2.f32 %v2913_v22  ;;  %v3002_v27 = vadd.f32 %v3001_v17, %v2404_v37 }
 0x420   : > { %v2914_v29 = vmul.f32 -1.442695, %v3000_v25  ;;  %v1472_v63 = vpop.f32.mrb[14].mxu0 }
 0x421   : > { %v2915_v30 = vmul.f32 -1.442695, %v3002_v27  ;;  %v2408_v1 = vpop.f32.mrb[4].mxu1  ;;  %v1474_v31 = vpop.f32.mrb[15].mxu0  ;;  %v3007_v36 = vadd.f32 %v1472_v63, %v711_v33 }
 0x422   : > { %3304 = vpow2.f32 %v2914_v29  ;;  %v4124_v14 = vadd.f32 %v3003_v28, %v2408_v1  ;;  %v2410_v32 = vpop.f32.mrb[5].mxu1  ;;  %v3009_v39 = vadd.f32 %v1474_v31, %v711_v33  ;;  %v3333_v29 = vld [vmem:[%s3443_s22 + $0x20] sm:$0xff] }
 0x423   : > { %3306 = vpow2.f32 %v2915_v30  ;;  %v4126_v34 = vadd.f32 %v3005_v58, %v2410_v32 }
 0x424   : > { %v1478_v38 = vpop.f32.mrb[16].mxu0  ;;  %vm2503_vm12 = vcmp.ge.f32.partialorder %v4124_v14, 0.0 }
 0x425   : > { %v2414_v41 = vpop.f32.mrb[6].mxu1  ;;  %v1480_v42 = vpop.f32.mrb[17].mxu0  ;;  %v3011_v62 = vadd.f32 %v1478_v38, %v716_v45  ;;  %vm2504_vm13 = vcmp.ge.f32.partialorder %v4126_v34, 0.0 }
 0x426   : > { %v4128_v43 = vadd.f32 %v3007_v36, %v2414_v41  ;;  %v2416_v44 = vpop.f32.mrb[7].mxu1  ;;  %v3013_v51 = vadd.f32 %v1480_v42, %v716_v45 }
 0x427   : > { %v4130_v46 = vadd.f32 %v3009_v39, %v2416_v44  ;;  %v3335_v39 = vld [vmem:[%s3443_s22 + $0x30] sm:$0xff]  ;;  %v3336_v44 = vld [vmem:[%s3443_s22 + $0x38] sm:$0xff] }
 0x428   : > { %v3301_v61 = vpop.eup %3300  ;;  %v1484_v48 = vpop.f32.mrb[18].mxu0  ;;  %vm2505_vm14 = vcmp.ge.f32.partialorder %v4128_v43, 0.0 }
 0x429   : > { %v3303_v49 = vpop.eup %3302  ;;  %v2475_v50 = vadd.f32 1.0, %v3301_v61  ;;  %v2420_v53 = vpop.f32.mrb[8].mxu1  ;;  %v3015_v2 = vadd.f32 %v1484_v48, %v721_v59  ;;  %vm2506_vm15 = vcmp.ge.f32.partialorder %v4130_v46, 0.0 }
 0x42a   : > { %v1486_v54 = vpop.f32.mrb[19].mxu0  ;;  %v2476_v55 = vadd.f32 1.0, %v3303_v49  ;;  %v3012_v56 = vadd.f32 %v3011_v62, %v2420_v53  ;;  %v2422_v57 = vpop.f32.mrb[9].mxu1 }
 0x42b   : > { %3308 = vrcp.f32 %v2475_v50  ;;  %v3014_v35 = vadd.f32 %v3013_v51, %v2422_v57  ;;  %v3017_v9 = vadd.f32 %v1486_v54, %v721_v59  ;;  %v2511_v59 = vmul.f32 0.2, %v4124_v14 }
 0x42c   : > { %v3305_v60 = vpop.eup %3304  ;;  %3310 = vrcp.f32 %v2476_v55  ;;  %v1608_v5 = vpop.f32.mrb[4].mxu0  ;;  %v2515_v24 = vmul.f32 0.2, %v3012_v56  ;;  %vm2507_vm8 = vcmp.ge.f32.partialorder %v3012_v56, 0.0 }
 0x42d   : > { %v3307_v7 = vpop.eup %3306  ;;  %v2477_v8 = vadd.f32 1.0, %v3305_v60  ;;  %v2987_v10 = vadd.f32 %v1608_v5, %v4112_v3  ;;  %v2426_v11 = vpop.f32.mrb[10].mxu1  ;;  %vm2508_vm9 = vcmp.ge.f32.partialorder %v3014_v35, 0.0  ;;  %v3337_v5 = vld [vmem:[%s3443_s22] sm:$0xff] }
 0x42e   : > { %v1610_v12 = vpop.f32.mrb[5].mxu0  ;;  %v2478_v13 = vadd.f32 1.0, %v3307_v7  ;;  %v3016_v15 = vadd.f32 %v3015_v2, %v2426_v11  ;;  %v2428_v18 = vpop.f32.mrb[11].mxu1  ;;  %v2523_v58 = vsel %vm2507_vm8, %v3012_v56, %v2515_v24 }
 0x42f   : > { %v2989_v16 = vadd.f32 %v1610_v12, %v4112_v3  ;;  %3312 = vrcp.f32 %v2477_v8  ;;  %v2988_v0 = vadd.f32 %v2987_v10, %v4114_v4  ;;  %v3018_v19 = vadd.f32 %v3017_v9, %v2428_v18  ;;  %v3338_v10 = vld [vmem:[%s3443_s22 + $0x8] sm:$0xff] }
 0x430   : > { %3314 = vrcp.f32 %v2478_v13  ;;  %v1614_v21 = vpop.f32.mrb[6].mxu0  ;;  %v2516_v3 = vmul.f32 0.2, %v3014_v35  ;;  %vm2509_vm10 = vcmp.ge.f32.partialorder %v3016_v15, 0.0  ;;  %v2519_v8 = vsel %vm2503_vm12, %v4124_v14, %v2511_v59 }
 0x431   : > { %v2990_v20 = vadd.f32 %v2989_v16, %v4116_v40  ;;  %v2908_v17 = vmul.f32 -1.442695, %v2988_v0  ;;  %v2991_v22 = vadd.f32 %v1614_v21, %v4118_v47  ;;  %v1616_v23 = vpop.f32.mrb[7].mxu0  ;;  %v2518_v32 = vmul.f32 0.2, %v3018_v19  ;;  %v3339_v0 = vld [vmem:[%s3443_s22 + $0x10] sm:$0xff] }
 0x432   : > { %v2993_v37 = vadd.f32 %v1616_v23, %v4118_v47  ;;  %v3334_v47 = vld [vmem:[%s3443_s22 + $0x28] sm:$0xff]  ;;  %v2524_v1 = vsel %vm2508_vm9, %v3014_v35, %v2516_v3  ;;  %vm2510_vm11 = vcmp.ge.f32.partialorder %v3018_v19, 0.0  ;;  %v2512_v35 = vmul.f32 0.2, %v4126_v34  ;;  %v3340_v21 = vld [vmem:[%s3443_s22 + $0x18] sm:$0xff] }
 0x433   : > { %v2909_v25 = vmul.f32 -1.442695, %v2990_v20  ;;  %3316 = vpow2.f32 %v2908_v17  ;;  %v2992_v4 = vadd.f32 %v2991_v22, %v4120_v6  ;;  %v2526_v62 = vsel %vm2510_vm11, %v3018_v19, %v2518_v32 }
 0x434   : > { %v2994_v40 = vadd.f32 %v2993_v37, %v4122_v52  ;;  %v2517_v52 = vmul.f32 0.2, %v3016_v15  ;;  %v2513_v9 = vmul.f32 0.2, %v4128_v43  ;;  %v2520_v12 = vsel %vm2504_vm13, %v4126_v34, %v2512_v35 }
 0x435   : > { %3318 = vpow2.f32 %v2909_v25  ;;  %v3309_v26 = vpop.eup %3308  ;;  %v2910_v27 = vmul.f32 -1.442695, %v2992_v4  ;;  %v2514_v13 = vmul.f32 0.2, %v4130_v46 }
 0x436   : > { %v3311_v28 = vpop.eup %3310  ;;  %v2499_v63 = vmul.f32 %v3333_v29, %v3309_v26  ;;  %v2911_v30 = vmul.f32 -1.442695, %v2994_v40  ;;  %v2525_v42 = vsel %vm2509_vm10, %v3016_v15, %v2517_v52  ;;  %v2521_v20 = vsel %vm2505_vm14, %v4128_v43, %v2513_v9 }
 0x437   : > { %v2500_v6 = vmul.f32 %v3334_v47, %v3311_v28  ;;  %3320 = vpow2.f32 %v2910_v27  ;;  %v2522_v17 = vsel %vm2506_vm15, %v4130_v46, %v2514_v13 }
 0x438   : > { %v2531_v31 = vadd.f32 %v2523_v58, %v2499_v63  ;;  %3322 = vpow2.f32 %v2911_v30 }
 0x439   : > { %v3313_v33 = vpop.eup %3312  ;;  %v2532_v36 = vadd.f32 %v2524_v1, %v2500_v6 }
 0x43a   : > { %v3315_v38 = vpop.eup %3314  ;;  %2539 = vst [vmem:[%s4146_s24 + $0x20] sm:$0xff] %v2531_v31  ;;  %v2501_v41 = vmul.f32 %v3335_v39, %v3313_v33 }
 0x43b   : > { %2540 = vst [vmem:[%s4146_s24 + $0x28] sm:$0xff] %v2532_v36  ;;  %v2502_v45 = vmul.f32 %v3336_v44, %v3315_v38 }
 0x43c   : > { %v2533_v61 = vadd.f32 %v2525_v42, %v2501_v41 }
 0x43d   : > { %v3317_v48 = vpop.eup %3316  ;;  %v2534_v49 = vadd.f32 %v2526_v62, %v2502_v45 }
 0x43e   : > { %v2471_v51 = vadd.f32 1.0, %v3317_v48  ;;  %2541 = vst [vmem:[%s4146_s24 + $0x30] sm:$0xff] %v2533_v61 }
 0x43f   : > { %v3319_v50 = vpop.eup %3318  ;;  %2542 = vst [vmem:[%s4146_s24 + $0x38] sm:$0xff] %v2534_v49 }
 0x440   : > { %v2472_v53 = vadd.f32 1.0, %v3319_v50  ;;  %3324 = vrcp.f32 %v2471_v51 }
 0x441   : > { %v3321_v54 = vpop.eup %3320 }
 0x442   : > { %3326 = vrcp.f32 %v2472_v53  ;;  %v3323_v55 = vpop.eup %3322  ;;  %v2473_v56 = vadd.f32 1.0, %v3321_v54 }
 0x443   : > { %v2474_v57 = vadd.f32 1.0, %v3323_v55 }
 0x444   : > { %3328 = vrcp.f32 %v2473_v56 }
 0x445   : > { %3330 = vrcp.f32 %v2474_v57 }
 0x44a   : > { %v3325_v60 = vpop.eup %3324 }
 0x44b   : > { %v2495_v7 = vmul.f32 %v3337_v5, %v3325_v60 }
 0x44c   : > { %v3327_v2 = vpop.eup %3326 }
 0x44d   : > { %v2496_v11 = vmul.f32 %v3338_v10, %v3327_v2  ;;  %v2527_v15 = vadd.f32 %v2519_v8, %v2495_v7 }
 0x44e   : > { %v3329_v16 = vpop.eup %3328 }
 0x44f   : > { %v2528_v18 = vadd.f32 %v2520_v12, %v2496_v11  ;;  %v3331_v14 = vpop.eup %3330  ;;  %2535 = vst [vmem:[%s4146_s24] sm:$0xff] %v2527_v15  ;;  %v2497_v19 = vmul.f32 %v3339_v0, %v3329_v16 }
 0x450   : > { %v2498_v34 = vmul.f32 %v3340_v21, %v3331_v14 }
 0x451   : > { %2536 = vst [vmem:[%s4146_s24 + $0x8] sm:$0xff] %v2528_v18  ;;  %v2529_v22 = vadd.f32 %v2521_v20, %v2497_v19 }
 0x452   : > { %v2530_v23 = vadd.f32 %v2522_v17, %v2498_v34 }
 0x453   : > { %2537 = vst [vmem:[%s4146_s24 + $0x10] sm:$0xff] %v2529_v22 }
 0x454   : > { %2538 = vst [vmem:[%s4146_s24 + $0x18] sm:$0xff] %v2530_v23 }
 0x455 PF: > { %s21_s13 = sadd.s32 1, %s3347_s13  }
 0x456   : > { %p18_p4 = scmp.ge.s32.totalorder %s21_s13, 4  }
 0x458   :  { %20 = sbr.rel (!%p18_p4) target bundleno = 1 (0x1), region = 128 }

</bundles_post_ra>
